<compile_context>
chip_gen: v5e
topology: v5e:2x2
jax: 0.10.0
libtpu: 0.0.40
codegen_flags: <defaults>
</compile_context>

<pallas_src>
import functools

import jax
import jax.numpy as jnp
from jax.experimental import pallas as pl
from jax.experimental.pallas import tpu as pltpu


def _pos_embed_kernel(colT_ref, rowT_ref, out_ref, *, H, W, F):
    """out block is (2F, H*W); write col half then row half, both lane-dense."""
    colT = colT_ref[...]                                   # (F, W) = col_embed[:W].T
    rowT = rowT_ref[...]                                   # (F, H) = row_embed[:H].T
    # col half:  out[f, h*W + w] = colT[f, w]   (tile across h)
    out_ref[:F, :] = jnp.broadcast_to(colT[:, None, :], (F, H, W)).reshape(F, H * W)
    # row half:  out[F + f, h*W + w] = rowT[f, h]  (repeat across w)
    out_ref[F:, :] = jnp.broadcast_to(rowT[:, :, None], (F, H, W)).reshape(F, H * W)


def position_embedding_learned(x, col_weight, row_weight):
    """x: (B, C, H, W) NCHW. Returns (B, 2F, H, W) learned position embedding."""
    B, _, H, W = x.shape
    F = col_weight.shape[1]
    assert row_weight.shape[1] == F
    assert H <= row_weight.shape[0] and W <= col_weight.shape[0]

    # Tiny pre-slice + transpose so the kernel sees feature-major weights and
    # never DMAs the unused (num_embeddings - W/H) rows of the tables.
    colT = col_weight[:W].T     # (F, W)
    rowT = row_weight[:H].T     # (F, H)

    pos_flat = pl.pallas_call(
        functools.partial(_pos_embed_kernel, H=H, W=W, F=F),
        grid=(B,),
        out_shape=jax.ShapeDtypeStruct((B, 2 * F, H * W), col_weight.dtype),
        in_specs=[
            pl.BlockSpec((F, W), lambda b: (0, 0)),
            pl.BlockSpec((F, H), lambda b: (0, 0)),
        ],
        # Squeeze the batch dim; lane axis is H*W (multiple of 128) -> unmasked vst.
        out_specs=pl.BlockSpec((None, 2 * F, H * W), lambda b: (b, 0, 0)),
        compiler_params=pltpu.CompilerParams(
            dimension_semantics=("parallel",)),
    )(colT, rowT)

    # Free (metadata-only) reshape back to the PyTorch NCHW output layout.
    return pos_flat.reshape(B, 2 * F, H, W)


def _reference(x, col_weight, row_weight):
    """Pure-JAX reference mirroring the PyTorch forward exactly."""
    B, _, H, W = x.shape
    x_emb = col_weight[jnp.arange(W)]                       # (W, F)
    y_emb = row_weight[jnp.arange(H)]                       # (H, F)
    pos = jnp.concatenate(
        [jnp.broadcast_to(x_emb[None, :, :], (H, W, x_emb.shape[-1])),
         jnp.broadcast_to(y_emb[:, None, :], (H, W, y_emb.shape[-1]))],
        axis=-1,
    )                                                       # (H, W, 2F)
    pos = jnp.transpose(pos, (2, 0, 1))[None]               # (1, 2F, H, W)
    return jnp.broadcast_to(pos, (B,) + pos.shape[1:])


if __name__ == "__main__":
    # Small shapes: batch=2, channels=4, spatial 16x16, num_pos_feats=32.
    B, C, H, W = 2, 4, 16, 16
    num_pos_feats = 32
    num_embeddings = 50  # nn.Embedding(50, num_pos_feats)

    key = jax.random.PRNGKey(0)
    k_row, k_col, k_x = jax.random.split(key, 3)

    # nn.init.uniform_ -> U[0, 1)
    row_embed = jax.random.uniform(k_row, (num_embeddings, num_pos_feats), jnp.float32)
    col_embed = jax.random.uniform(k_col, (num_embeddings, num_pos_feats), jnp.float32)
    x = jax.random.normal(k_x, (B, C, H, W), jnp.float32)

    out = position_embedding_learned(x, col_embed, row_embed)
    out = jax.block_until_ready(out)

    ref = _reference(x, col_embed, row_embed)
    assert out.shape == (B, 2 * num_pos_feats, H, W), out.shape
    assert out.dtype == jnp.float32
    assert jnp.allclose(out, ref), "mismatch vs reference"

    print("KERNEL_OK")
</pallas_src>

<mosaic_0001>
module attributes {stable_mosaic.version = 11 : i64} {
  func.func @_pos_embed_kernel(%arg0: i32, %arg1: memref<32x16xf32, #tpu.memory_space<vmem>>, %arg2: memref<32x16xf32, #tpu.memory_space<vmem>>, %arg3: memref<1x64x256xf32, #tpu.memory_space<vmem>>) attributes {dimension_semantics = [#tpu.dimension_semantics<parallel>], iteration_bounds = array<i64: 2>, scalar_prefetch = 0 : i64, scratch_operands = 0 : i64, tpu.core_type = #tpu.core_type<tc>, window_params = [{pipeline_mode = #tpu.pipeline_mode<synchronous>, transform_indices = @transform_0, window_bounds = array<i64: 32, 16>}, {pipeline_mode = #tpu.pipeline_mode<synchronous>, transform_indices = @transform_1, window_bounds = array<i64: 32, 16>}, {transform_indices = @transform_2, window_bounds = array<i64: 1, 64, 256>}]} {
    %c0 = arith.constant 0 : index
    %c0_0 = arith.constant 0 : index
    %0 = vector.load %arg1[%c0, %c0_0] : memref<32x16xf32, #tpu.memory_space<vmem>>, vector<32x16xf32>
    %c0_1 = arith.constant 0 : index
    %c0_2 = arith.constant 0 : index
    %1 = vector.load %arg2[%c0_1, %c0_2] : memref<32x16xf32, #tpu.memory_space<vmem>>, vector<32x16xf32>
    %2 = vector.shape_cast %0 : vector<32x16xf32> to vector<32x1x16xf32>
    %3 = vector.shape_cast %2 : vector<32x1x16xf32> to vector<32x1x16xf32>
    %4 = vector.broadcast %3 : vector<32x1x16xf32> to vector<32x16x16xf32>
    %5 = vector.shape_cast %4 : vector<32x16x16xf32> to vector<32x256xf32>
    %c0_3 = arith.constant 0 : index
    %c0_4 = arith.constant 0 : index
    %c0_5 = arith.constant 0 : index
    %6 = vector.load %arg3[%c0_3, %c0_4, %c0_5] : memref<1x64x256xf32, #tpu.memory_space<vmem>>, vector<1x32x256xf32>
    %7 = vector.shape_cast %6 : vector<1x32x256xf32> to vector<32x256xf32>
    %8 = vector.shape_cast %5 : vector<32x256xf32> to vector<1x32x256xf32>
    tpu.vector_store %arg3[%c0_3, %c0_4, %c0_5], %8 {strides = array<i32>} : memref<1x64x256xf32, #tpu.memory_space<vmem>>, vector<1x32x256xf32>,
    %9 = vector.shape_cast %1 : vector<32x16xf32> to vector<32x16x1xf32>
    %10 = vector.shape_cast %9 : vector<32x16x1xf32> to vector<32x16x1xf32>
    %11 = vector.broadcast %10 : vector<32x16x1xf32> to vector<32x16x16xf32>
    %12 = vector.shape_cast %11 : vector<32x16x16xf32> to vector<32x256xf32>
    %c0_6 = arith.constant 0 : index
    %c32 = arith.constant 32 : index
    %c0_7 = arith.constant 0 : index
    %13 = vector.load %arg3[%c0_6, %c32, %c0_7] : memref<1x64x256xf32, #tpu.memory_space<vmem>>, vector<1x32x256xf32>
    %14 = vector.shape_cast %13 : vector<1x32x256xf32> to vector<32x256xf32>
    %15 = vector.shape_cast %12 : vector<32x256xf32> to vector<1x32x256xf32>
    tpu.vector_store %arg3[%c0_6, %c32, %c0_7], %15 {strides = array<i32>} : memref<1x64x256xf32, #tpu.memory_space<vmem>>, vector<1x32x256xf32>,
    return
  }
  func.func @transform_0(%arg0: i32) -> (i32, i32) {
    %c0_i32 = arith.constant 0 : i32
    %c0_i32_0 = arith.constant 0 : i32
    %c0_i32_1 = arith.constant 0 : i32
    return %c0_i32, %c0_i32_0 : i32, i32
  }
  func.func @transform_1(%arg0: i32) -> (i32, i32) {
    %c0_i32 = arith.constant 0 : i32
    %c0_i32_0 = arith.constant 0 : i32
    %c0_i32_1 = arith.constant 0 : i32
    return %c0_i32, %c0_i32_0 : i32, i32
  }
  func.func @transform_2(%arg0: i32) -> (i32, i32, i32) {
    %c0_i32 = arith.constant 0 : i32
    %c0_i32_0 = arith.constant 0 : i32
    %c0_i32_1 = arith.constant 0 : i32
    return %arg0, %c0_i32, %c0_i32_0 : i32, i32, i32
  }
}

</mosaic_0001>

<bundles_post_ra>
// kernel: tpu_custom_call.1
= control target key start
LH: loop header
LB: loop body
LE: loop exit
PB: predicated region body
PF: predicated region fallthrough
CT: control target
= control target key end

     0   :  { %7 = vsyncpa [#allocation3], 0  ;;  %s4222_s0 = inlined_call_operand.vmem [shape: f32[32,16], index: 0, kind: input, shape index: {}]   ;;  %s4223_s1 = inlined_call_operand.vmem [shape: f32[32,16], index: 1, kind: input, shape index: {}]   ;;  %s4224_s2 = inlined_call_operand.hbm [shape: f32[2,64,256], index: 2, kind: output, shape index: {}]  }
   0x1   :  { %9 = vsyncpa [#allocation3 + $0x1], 0  ;;  %s2674_s9 = smov 0   ;;  %s2676_s10 = smov 0  }
   0x2   :  { %s2678_s11 = smov 0   ;;  %s2680_s12 = smov 0  }
   0x3 LB: > { %s2495_s13 = sadd.s32 4294967295, %s2647_s12   ;;  %s2496_s14 = sadd.s32 4294967294, %s2647_s12   ;;  %s2647_s12 = sphi %s2680_s12, %s4263_s12   ;;  %s2643_s11 = sphi %s2678_s11, %s4262_s11   ;;  %s2639_s10 = sphi %s2676_s10, %s4261_s10   ;;  %s2635_s9 = sphi %s2674_s9, %s4260_s9  }
   0x4   : > { %s2697_s15 = sadd.s32 1, %s2647_s12   ;;  %s64_s16 = sadd.s32 1, %s2643_s11 }
   0x5   : > { %s61_s17 = ssub.s32 %s2647_s12, %s2697_s15  ;;  %p74_p0 = scmp.ne.s32.totalorder %s2643_s11, %s2639_s10 }
   0x6   : > { %p62_p1 = scmp.eq.s32.totalorder %s61_s17, 0  ;;  %p75_p2 = scmp.eq.s32.totalorder %s2495_s13, 1 }
   0x7   : > { %p80_p3 = scmp.ne.s32.totalorder %s2639_s10, %s2635_s9  ;;  %p81_p4 = scmp.eq.s32.totalorder %s2496_s14, 1 }
   0x8   : > { %s2709_s18 = scalar_select %p62_p1, %s2643_s11, %s64_s16  }
   0x9   : > { %p2711_p5 = por %p75_p2, %p74_p0  ;;  %p2715_p6 = por %p81_p4, %p80_p3 }
   0xa   : > { %p2498_p7 = scmp.ge.s32.totalorder %s2647_s12, 1  ;;  %p105_p8 = scmp.lt.s32.totalorder %s2647_s12, 3 }
   0xc   : > { %p106_p9 = pnand %p2498_p7, %p105_p8 }
   0xe   : > { %109 = sbr.rel (%p106_p9) target bundleno = 789 (0x315), region = 28 }
  0x13   : > { %v2724_v0 = vld [vmem:[%s4222_s0 + $0x10] sm:$0xff]  ;;  %vm227_vm0 = vcmask 1047556   ;;  %v2649_v16 = vmov 1983009808   ;;  %v2650_v18 = vmov 1934713408  }
  0x14   : > { %v148_v1 = vrot.slane %v2724_v0, 1  ;;  %v149_v2 = vrot.slane %v2724_v0, 2  ;;  %v150_v3 = vrot.slane %v2724_v0, 3  ;;  %v151_v4 = vrot.slane %v2724_v0, 4  ;;  %v2757_v25 = vld [vmem:[%s4222_s0] sm:$0xff]  ;;  %v2827_v62 = vld [vmem:[%s4222_s0 + $0x18] sm:$0xff] }
  0x15   : > { %v152_v5 = vrot.slane %v2724_v0, 5  ;;  %v153_v6 = vrot.slane %v2724_v0, 6  ;;  %v154_v7 = vrot.slane %v2724_v0, 7  ;;  %v4227_v8 = vperm.slane %v2724_v0, 0  ;;  %s2651_s27 = smov 16   ;;  %s2652_s30 = smov 32  }
  0x16   : > { %v2734_v9 = vperm.slane %v148_v1, 0  ;;  %v2736_v10 = vperm.slane %v149_v2, 0  ;;  %v2738_v11 = vperm.slane %v150_v3, 0  ;;  %v2740_v12 = vperm.slane %v151_v4, 0  ;;  %s2653_s3 = smov 48   ;;  %s2654_s4 = smov 64  }
  0x17   : > { %v2742_v13 = vperm.slane %v152_v5, 0  ;;  %v2744_v14 = vperm.slane %v153_v6, 0  ;;  %v2746_v15 = vperm.slane %v154_v7, 0  ;;  %v232_v17 = vunpack.c.l.s4 %v2649_v16  ;;  %s2655_s5 = smov 80   ;;  %s2656_s6 = smov 96  }
  0x18   : > { %v280_v19 = vunpack.c.l.s4 %v2650_v18  ;;  %v451_v20 = vrot.slane %v2736_v10, 4  ;;  %v463_v21 = vrot.slane %v2738_v11, 4  ;;  %v134_v29 = vrot.slane %v2757_v25, 1  ;;  %s2657_s7 = smov 112   ;;  %s119_s25 = sand.u32 1, %s2639_s10  }
  0x19   : > { %v2750_v22 = vunpack.c.0.s8 %v232_v17  ;;  %v475_v23 = vrot.slane %v2744_v14, 4  ;;  %v487_v24 = vrot.slane %v2746_v15, 4  ;;  %v135_v36 = vrot.slane %v2757_v25, 2  ;;  %s2499_s26 = sshll.u32 %s119_s25, 7  ;;  %s2505_s29 = sshll.u32 %s2495_s13, 7 }
  0x1a   : > { %v2759_v26 = vunpack.c.0.s8 %v280_v19  ;;  %v452_v27 = vsel %vm227_vm0, %v451_v20, %v4227_v8  ;;  %v464_v28 = vsel %vm227_vm0, %v463_v21, %v2734_v9  ;;  %v136_v37 = vrot.slane %v2757_v25, 3  ;;  %s3317_s28 = scalar_lea.vmem [#allocation2], %s2499_s26  ;;  %s2605_s17 = scalar_lea.hbm %s4224_s2, 256 }
  0x1b   : > { %v2768_v30 = vperm.slane %v452_v27, %v2750_v22  ;;  %v2771_v31 = vperm.slane %v464_v28, %v2750_v22  ;;  %v476_v32 = vsel %vm227_vm0, %v475_v23, %v2740_v12  ;;  %v488_v33 = vsel %vm227_vm0, %v487_v24, %v2742_v13  ;;  %s2443_s13 = sshll.u32 %s3317_s28, 4  ;;  %s2444_s13 = int_to_ptr.vmem [resolvable:$true] %s2443_s13 }
  0x1c   : > { %v2778_v34 = vperm.slane %v476_v32, %v2750_v22  ;;  %v2781_v35 = vperm.slane %v488_v33, %v2750_v22  ;;  %v137_v39 = vrot.slane %v2757_v25, 4  ;;  %v138_v40 = vrot.slane %v2757_v25, 5 }
  0x1d   : > { %v499_v38 = vrot.slane %v2771_v31, 4  ;;  %v139_v41 = vrot.slane %v2757_v25, 6  ;;  %v140_v43 = vrot.slane %v2757_v25, 7  ;;  %v4226_v44 = vperm.slane %v2757_v25, 0 }
  0x1e   : > { %v523_v42 = vrot.slane %v2781_v35, 4  ;;  %v2794_v46 = vperm.slane %v134_v29, 0  ;;  %v2796_v47 = vperm.slane %v135_v36, 0  ;;  %v2798_v48 = vperm.slane %v136_v37, 0 }
  0x1f   : > { %v500_v45 = vsel %vm227_vm0, %v499_v38, %v2768_v30  ;;  %v2805_v51 = vperm.slane %v137_v39, 0  ;;  %v2807_v52 = vperm.slane %v138_v40, 0  ;;  %v2812_v54 = vperm.slane %v139_v41, 0 }
  0x20   : > { %v2801_v49 = vperm.slane %v500_v45, %v2759_v26  ;;  %v524_v50 = vsel %vm227_vm0, %v523_v42, %v2778_v34  ;;  %v2814_v55 = vperm.slane %v140_v43, 0  ;;  %v226_v56 = vrot.slane %v2796_v47, 4 }
  0x21   : > { %v2810_v53 = vperm.slane %v524_v50, %v2759_v26  ;;  %v239_v58 = vrot.slane %v2798_v48, 4  ;;  %v251_v60 = vrot.slane %v2812_v54, 4  ;;  %v155_v3 = vrot.slane %v2827_v62, 1 }
  0x22   : > { %v549_v57 = vrot.slane %v2801_v49, 4  ;;  %v228_v59 = vsel %vm227_vm0, %v226_v56, %v4226_v44  ;;  %v263_v61 = vrot.slane %v2814_v55, 4  ;;  %v156_v7 = vrot.slane %v2827_v62, 2 }
  0x23   : > { %v234_v1 = vperm.slane %v228_v59, %v2750_v22  ;;  %v240_v2 = vsel %vm227_vm0, %v239_v58, %v2794_v46  ;;  %v252_v5 = vsel %vm227_vm0, %v251_v60, %v2805_v51  ;;  %v157_v19 = vrot.slane %v2827_v62, 3 }
  0x24   : > { %v550_v63 = vsel %vm227_vm0, %v2810_v53, %v549_v57  ;;  %v246_v4 = vperm.slane %v240_v2, %v2750_v22  ;;  %v264_v6 = vsel %vm227_vm0, %v263_v61, %v2807_v52  ;;  %v258_v16 = vperm.slane %v252_v5, %v2750_v22  ;;  %v2887_v2 = vld [vmem:[%s4222_s0 + $0x8] sm:$0xff] }
  0x25   : > { %683 = vrot.lane.b32.xlu1 %v550_v63, %s2651_s27  ;;  %v270_v17 = vperm.slane %v264_v6, %v2750_v22  ;;  %v277_v18 = vrot.slane %v234_v1, 4  ;;  %v158_v21 = vrot.slane %v2827_v62, 4  ;;  %v159_v23 = vrot.slane %v2827_v62, 5 }
  0x26   : > { %v275_v20 = vrot.slane %v246_v4, 4  ;;  %v160_v24 = vrot.slane %v2827_v62, 6  ;;  %v301_v28 = vrot.slane %v258_v16, 4  ;;  %v161_v32 = vrot.slane %v2827_v62, 7 }
  0x27   : > { %v278_v27 = vsel %vm227_vm0, %v246_v4, %v277_v18  ;;  %v299_v29 = vrot.slane %v270_v17, 4  ;;  %v4225_v37 = vperm.slane %v2827_v62, 0  ;;  %v2855_v38 = vperm.slane %v155_v3, 0 }
  0x28   : > { %v2851_v33 = vperm.slane %v278_v27, %v2759_v26  ;;  %v276_v36 = vsel %vm227_vm0, %v275_v20, %v234_v1  ;;  %v302_v39 = vsel %vm227_vm0, %v270_v17, %v301_v28  ;;  %v2862_v42 = vperm.slane %v156_v7, 0 }
  0x29   : > { %v2859_v40 = vperm.slane %v276_v36, %v2759_v26  ;;  %v300_v41 = vsel %vm227_vm0, %v299_v29, %v258_v16  ;;  %v2865_v43 = vperm.slane %v302_v39, %v2759_v26  ;;  %v2870_v50 = vperm.slane %v157_v19, 0 }
  0x2a   : > { %v2868_v45 = vperm.slane %v300_v41, %v2759_v26  ;;  %v2872_v56 = vperm.slane %v158_v21, 0  ;;  %v2875_v58 = vperm.slane %v159_v23, 0  ;;  %v2877_v59 = vperm.slane %v160_v24, 0 }
  0x2b   : > { %v325_v57 = vrot.slane %v2859_v40, 4  ;;  %v2879_v60 = vperm.slane %v161_v32, 0  ;;  %v327_v61 = vrot.slane %v2865_v43, 4  ;;  %v563_v63 = vrot.slane %v2862_v42, 4 }
  0x2c   : > { %v575_v1 = vrot.slane %v2870_v50, 4  ;;  %v587_v4 = vrot.slane %v2877_v59, 4  ;;  %v141_v6 = vrot.slane %v2887_v2, 1  ;;  %v142_v18 = vrot.slane %v2887_v2, 2 }
  0x2d   : > { %v326_v3 = vsel %vm227_vm0, %v2868_v45, %v325_v57  ;;  %v599_v5 = vrot.slane %v2879_v60, 4  ;;  %v328_v7 = vsel %vm227_vm0, %v327_v61, %v2851_v33  ;;  %v564_v16 = vsel %vm227_vm0, %v563_v63, %v4225_v37 }
  0x2e   : > { %679 = vrot.lane.b32.xlu0 %v326_v3, %s2651_s27  ;;  %v576_v17 = vsel %vm227_vm0, %v575_v1, %v2855_v38  ;;  %695 = vrot.lane.b32.xlu2 %v328_v7, %s2652_s30  ;;  %v570_v19 = vperm.slane %v564_v16, %v2750_v22  ;;  %v588_v21 = vsel %vm227_vm0, %v587_v4, %v2872_v56  ;;  %v143_v28 = vrot.slane %v2887_v2, 3 }
  0x2f   : > { %v582_v20 = vperm.slane %v576_v17, %v2750_v22  ;;  %v600_v23 = vsel %vm227_vm0, %v599_v5, %v2875_v58  ;;  %v594_v24 = vperm.slane %v588_v21, %v2750_v22  ;;  %v144_v29 = vrot.slane %v2887_v2, 4 }
  0x30   : > { %v606_v27 = vperm.slane %v600_v23, %v2750_v22  ;;  %v145_v36 = vrot.slane %v2887_v2, 5  ;;  %v146_v39 = vrot.slane %v2887_v2, 6  ;;  %v147_v41 = vrot.slane %v2887_v2, 7 }
  0x31   : > { %v611_v32 = vrot.slane %v582_v20, 4  ;;  %v170_v61 = vperm.slane %v2887_v2, 0  ;;  %v2918_v63 = vperm.slane %v141_v6, 0  ;;  %v2920_v1 = vperm.slane %v142_v18, 0 }
  0x32   : > { %v635_v57 = vrot.slane %v606_v27, 4  ;;  %v2923_v4 = vperm.slane %v143_v28, 0  ;;  %v2925_v5 = vperm.slane %v144_v29, 0  ;;  %v2927_v7 = vperm.slane %v145_v36, 0 }
  0x33   : > { %v612_v3 = vsel %vm227_vm0, %v611_v32, %v570_v19  ;;  %v2933_v21 = vperm.slane %v146_v39, 0  ;;  %v2935_v2 = vperm.slane %v147_v41, 0  ;;  %v339_v18 = vrot.slane %v2920_v1, 4 }
  0x34   : > { %v2930_v16 = vperm.slane %v612_v3, %v2759_v26  ;;  %v636_v17 = vsel %vm227_vm0, %v635_v57, %v594_v24  ;;  %v351_v23 = vrot.slane %v2923_v4, 4  ;;  %v613_v28 = vrot.slane %v570_v19, 4 }
  0x35   : > { %v2938_v6 = vperm.slane %v636_v17, %v2759_v26  ;;  %v363_v32 = vrot.slane %v2933_v21, 4  ;;  %v375_v36 = vrot.slane %v2935_v2, 4  ;;  %v637_v3 = vrot.slane %v594_v24, 4 }
  0x36   : > { %4231 = vst [vmem:[#allocation5_spill] sm:$0xff] %v2930_v16  ;;  %v661_v29 = vrot.slane %v2930_v16, 4  ;;  %v525_v39 = vrot.slane %v2778_v34, 4  ;;  %v340_v41 = vsel %vm227_vm0, %v339_v18, %v170_v61  ;;  %v352_v57 = vsel %vm227_vm0, %v351_v23, %v2918_v63 }
  0x37   : > { %v614_v17 = vsel %vm227_vm0, %v582_v20, %v613_v28  ;;  %v346_v19 = vperm.slane %v340_v41, %v2750_v22  ;;  %v358_v44 = vperm.slane %v352_v57, %v2750_v22  ;;  %v364_v8 = vsel %vm227_vm0, %v363_v32, %v2925_v5 }
  0x38   : > { %v662_v37 = vsel %vm227_vm0, %v2938_v6, %v661_v29  ;;  %v370_v34 = vperm.slane %v364_v8, %v2750_v22  ;;  %v376_v24 = vsel %vm227_vm0, %v375_v36, %v2927_v7  ;;  %v2961_v18 = vperm.slane %v614_v17, %v2759_v26 }
  0x39   : > { %685 = vrot.lane.b32.xlu1 %v662_v37, %s2651_s27  ;;  %v638_v20 = vsel %vm227_vm0, %v606_v27, %v637_v3  ;;  %v382_v23 = vperm.slane %v376_v24, %v2750_v22  ;;  %v389_v28 = vrot.slane %v346_v19, 4  ;;  %v387_v29 = vrot.slane %v358_v44, 4 }
  0x3a   : > { %v2966_v41 = vperm.slane %v638_v20, %v2759_v26  ;;  %v413_v32 = vrot.slane %v370_v34, 4  ;;  %v501_v37 = vrot.slane %v2768_v30, 4  ;;  %v526_v8 = vsel %vm227_vm0, %v2781_v35, %v525_v39 }
  0x3b   : > { %v390_v36 = vsel %vm227_vm0, %v358_v44, %v389_v28  ;;  %v388_v57 = vsel %vm227_vm0, %v387_v29, %v346_v19  ;;  %v411_v17 = vrot.slane %v382_v23, 4  ;;  %v329_v30 = vrot.slane %v2851_v33, 4 }
  0x3c   : > { %v663_v27 = vrot.slane %v2966_v41, 4  ;;  %v2975_v3 = vperm.slane %v390_v36, %v2759_v26  ;;  %v414_v24 = vsel %vm227_vm0, %v382_v23, %v413_v32  ;;  %v2979_v20 = vperm.slane %v388_v57, %v2759_v26 }
  0x3d   : > { %v2983_v16 = vperm.slane %v414_v24, %v2759_v26  ;;  %v412_v35 = vsel %vm227_vm0, %v411_v17, %v370_v34  ;;  %v502_v39 = vsel %vm227_vm0, %v2771_v31, %v501_v37  ;;  %v534_v33 = vperm.slane %v526_v8, %v2759_v26 }
  0x3e   : > { %v664_v44 = vsel %vm227_vm0, %v663_v27, %v2961_v18  ;;  %v2991_v19 = vperm.slane %v412_v35, %v2759_v26  ;;  %v437_v23 = vrot.slane %v2979_v20, 4  ;;  %v510_v28 = vperm.slane %v502_v39, %v2759_v26 }
  0x3f   : > { %v477_v29 = vrot.slane %v2740_v12, 4  ;;  %v489_v32 = vrot.slane %v2742_v13, 4  ;;  %v439_v34 = vrot.slane %v2983_v16, 4  ;;  %v341_v36 = vrot.slane %v170_v61, 4 }
  0x40   : > { %v241_v57 = vrot.slane %v2794_v46, 4  ;;  %v438_v31 = vsel %vm227_vm0, %v2991_v19, %v437_v23  ;;  %v551_v37 = vrot.slane %v534_v33, 4  ;;  %v553_v17 = vrot.slane %v510_v28, 4 }
  0x41   : > { %701 = vrot.lane.b32.xlu1 %v664_v44, %s2652_s30  ;;  %v265_v27 = vrot.slane %v2807_v52, 4  ;;  %v440_v8 = vsel %vm227_vm0, %v439_v34, %v2975_v3  ;;  %681 = vrot.lane.b32.xlu0 %v438_v31, %s2651_s27  ;;  %v330_v12 = vsel %vm227_vm0, %v2865_v43, %v329_v30  ;;  %v665_v13 = vrot.slane %v2961_v18, 4 }
  0x42   : > { %697 = vrot.lane.b32.xlu2 %v440_v8, %s2652_s30  ;;  %v552_v46 = vsel %vm227_vm0, %v551_v37, %v510_v28  ;;  %v554_v61 = vsel %vm227_vm0, %v534_v33, %v553_v17  ;;  %v342_v24 = vsel %vm227_vm0, %v2920_v1, %v341_v36  ;;  %v353_v52 = vrot.slane %v2918_v63, 4 }
  0x43   : > { %v365_v35 = vrot.slane %v2925_v5, 4  ;;  %v377_v44 = vrot.slane %v2927_v7, 4  ;;  %v4232_v39 = vperm.slane %v2724_v0, 0  ;;  %v465_v18 = vrot.slane %v2734_v9, 4 }
  0x44   : > { %v354_v30 = vsel %vm227_vm0, %v2923_v4, %v353_v52  ;;  %v478_v23 = vsel %vm227_vm0, %v2744_v14, %v477_v29  ;;  %v490_v1 = vsel %vm227_vm0, %v2746_v15, %v489_v32  ;;  %v4233_v63 = vperm.slane %v2757_v25, 0 }
  0x45   : > { %v453_v43 = vrot.slane %v4232_v39, 4  ;;  %v3030_v5 = vperm.slane %v342_v24, %v2750_v22  ;;  %v3033_v0 = vperm.slane %v354_v30, %v2750_v22  ;;  %v366_v9 = vsel %vm227_vm0, %v2933_v21, %v365_v35 }
  0x46   : > { %v229_v28 = vrot.slane %v4233_v63, 4  ;;  %v378_v4 = vsel %vm227_vm0, %v2935_v2, %v377_v44  ;;  %v3040_v14 = vperm.slane %v366_v9, %v2750_v22  ;;  %v466_v7 = vsel %vm227_vm0, %v2738_v11, %v465_v18 }
  0x47   : > { %v3043_v15 = vperm.slane %v378_v4, %v2750_v22  ;;  %v454_v25 = vsel %vm227_vm0, %v2736_v10, %v453_v43  ;;  %v399_v33 = vrot.slane %v3033_v0, 4  ;;  %v3051_v29 = vperm.slane %v466_v7, %v2750_v22 }
  0x48   : > { %v3054_v21 = vperm.slane %v478_v23, %v2750_v22  ;;  %v3057_v2 = vperm.slane %v490_v1, %v2750_v22  ;;  %v230_v10 = vsel %vm227_vm0, %v2796_v47, %v229_v28  ;;  %v242_v11 = vsel %vm227_vm0, %v2798_v48, %v241_v57 }
  0x49   : > { %715 = vrot.lane.b32.xlu1 %v554_v61, %s2653_s3  ;;  %v423_v32 = vrot.slane %v3043_v15, 4  ;;  %v253_v34 = vrot.slane %v2805_v51, 4  ;;  %699 = vrot.lane.b32.xlu0 %v552_v46, %s2652_s30  ;;  %v441_v36 = vrot.slane %v2975_v3, 4  ;;  %v400_v31 = vsel %vm227_vm0, %v399_v33, %v3030_v5 }
  0x4a   : > { %v535_v37 = vrot.slane %v3057_v2, 4  ;;  %711 = vrot.lane.b32.xlu2 %v330_v12, %s2653_s3  ;;  %v3075_v47 = vperm.slane %v230_v10, %v2750_v22  ;;  %v3078_v48 = vperm.slane %v242_v11, %v2750_v22  ;;  %v666_v3 = vsel %vm227_vm0, %v2966_v41, %v665_v13 }
  0x4b   : > { %v424_v17 = vsel %vm227_vm0, %v423_v32, %v3040_v14  ;;  %v254_v51 = vsel %vm227_vm0, %v2812_v54, %v253_v34  ;;  %v3085_v57 = vperm.slane %v400_v31, %v2759_v26  ;;  %v3091_v12 = vperm.slane %v454_v25, %v2750_v22 }
  0x4c   : > { %v3088_v8 = vperm.slane %v424_v17, %v2759_v26  ;;  %v511_v46 = vrot.slane %v3051_v29, 4  ;;  %v536_v61 = vsel %vm227_vm0, %v535_v37, %v3054_v21  ;;  %v266_v54 = vsel %vm227_vm0, %v2814_v55, %v265_v27 }
  0x4d   : > { %v287_v24 = vrot.slane %v3078_v48, 4  ;;  %v262_v13 = vperm.slane %v254_v51, %v2750_v22  ;;  %v274_v52 = vperm.slane %v266_v54, %v2750_v22  ;;  %v4234_v35 = vperm.slane %v2827_v62, 0 }
  0x4e   : > { %v443_v41 = vrot.slane %v3088_v8, 4  ;;  %v442_v39 = vsel %vm227_vm0, %v2983_v16, %v441_v36  ;;  %v577_v18 = vrot.slane %v2855_v38, 4  ;;  %v589_v55 = vrot.slane %v2872_v56, 4 }
  0x4f   : > { %v565_v44 = vrot.slane %v4234_v35, 4  ;;  %v288_v43 = vsel %vm227_vm0, %v287_v24, %v3075_v47  ;;  %v3113_v30 = vperm.slane %v536_v61, %v2759_v26  ;;  %v311_v62 = vrot.slane %v274_v52, 4 }
  0x50   : > { %v444_v27 = vsel %vm227_vm0, %v443_v41, %v3085_v57  ;;  %v294_v23 = vperm.slane %v288_v43, %v2759_v26  ;;  %v512_v16 = vsel %vm227_vm0, %v511_v46, %v3091_v12  ;;  %v578_v56 = vsel %vm227_vm0, %v2870_v50, %v577_v18 }
  0x51   : > { %729 = vrot.lane.b32.xlu1 %v444_v27, %s2654_s4  ;;  %v566_v38 = vsel %vm227_vm0, %v2862_v42, %v565_v44  ;;  %713 = vrot.lane.b32.xlu0 %v442_v39, %s2653_s3  ;;  %v312_v1 = vsel %vm227_vm0, %v311_v62, %v262_v13  ;;  %v3129_v9 = vperm.slane %v578_v56, %v2750_v22  ;;  %v601_v50 = vrot.slane %v2875_v58, 4 }
  0x52   : > { %v333_v63 = vrot.slane %v294_v23, 4  ;;  %v3126_v28 = vperm.slane %v566_v38, %v2750_v22  ;;  %717 = vrot.lane.b32.xlu2 %v666_v3, %s2653_s3  ;;  %v318_v4 = vperm.slane %v312_v1, %v2759_v26  ;;  %v590_v42 = vsel %vm227_vm0, %v2877_v59, %v589_v55 }
  0x53   : > { %v518_v25 = vperm.slane %v512_v16, %v2759_v26  ;;  %v555_v7 = vrot.slane %v3113_v30, 4  ;;  %v623_v33 = vrot.slane %v3129_v9, 4  ;;  %v602_v10 = vsel %vm227_vm0, %v2879_v60, %v601_v50 }
  0x54   : > { %v331_v32 = vrot.slane %v318_v4, 4  ;;  %v334_v11 = vsel %vm227_vm0, %v318_v4, %v333_v63  ;;  %v598_v34 = vperm.slane %v590_v42, %v2750_v22  ;;  %v610_v36 = vperm.slane %v602_v10, %v2750_v22 }
  0x55   : > { %v624_v59 = vsel %vm227_vm0, %v623_v33, %v3126_v28  ;;  %v556_v31 = vsel %vm227_vm0, %v555_v7, %v518_v25  ;;  %v537_v51 = vrot.slane %v3054_v21, 4  ;;  %v313_v60 = vrot.slane %v262_v13, 4 }
  0x56   : > { %v332_v58 = vsel %vm227_vm0, %v331_v32, %v294_v23  ;;  %v630_v37 = vperm.slane %v624_v59, %v2759_v26  ;;  %v647_v17 = vrot.slane %v610_v36, 4  ;;  %v513_v54 = vrot.slane %v3091_v12, 4 }
  0x57   : > { %v538_v24 = vsel %vm227_vm0, %v3057_v2, %v537_v51  ;;  %v445_v21 = vrot.slane %v3085_v57, 4  ;;  %v831_v41 = vlaneseq  ;;  %v289_v13 = vrot.slane %v3075_v47, 4 }
  0x58   : > { %v648_v3 = vsel %vm227_vm0, %v647_v17, %v598_v34  ;;  %v669_v46 = vrot.slane %v630_v37, 4  ;;  %v314_v44 = vsel %vm227_vm0, %v274_v52, %v313_v60  ;;  %v546_v43 = vperm.slane %v538_v24, %v2759_v26 }
  0x59   : > { %743 = vrot.lane.b32.xlu1 %v334_v11, %s2655_s5  ;;  %727 = vrot.lane.b32.xlu0 %v332_v58, %s2654_s4  ;;  %v654_v61 = vperm.slane %v648_v3, %v2759_v26  ;;  %v3163_v18 = vshrl.u32 %v831_v41, 7  ;;  %v514_v12 = vsel %vm227_vm0, %v3051_v29, %v513_v54  ;;  %v446_v2 = vsel %vm227_vm0, %v3088_v8, %v445_v21  ;;  %v3230_v3 = vld [vmem:[%s4223_s1 + $0x8] sm:$0xff]  ;;  %v3243_v21 = vld [vmem:[%s4223_s1 + $0x10] sm:$0xff] }
  0x5a   : > { %731 = vrot.lane.b32.xlu2 %v556_v31, %s2654_s4  ;;  %v322_v57 = vperm.slane %v314_v44, %v2759_v26  ;;  %v425_v47 = vrot.slane %v3040_v14, 4  ;;  %v290_v27 = vsel %vm227_vm0, %v3078_v48, %v289_v13  ;;  %v649_v23 = vrot.slane %v598_v34, 4 }
  0x5b   : > { %v667_v35 = vrot.slane %v654_v61, 4  ;;  %v670_v39 = vsel %vm227_vm0, %v654_v61, %v669_v46  ;;  %2555 = vset.pattern.permute.xlu1 %v3163_v18  ;;  %v3174_v52 = vadd.s32 8, %v3163_v18  ;;  %v401_v29 = vrot.slane %v3030_v5, 4 }
  0x5c   : > { %v522_v8 = vperm.slane %v514_v12, %v2759_v26  ;;  %v559_v62 = vrot.slane %v546_v43, 4  ;;  %v557_v14 = vrot.slane %v518_v25, 4  ;;  %v298_v16 = vperm.slane %v290_v27, %v2759_v26 }
  0x5d   : > { %v668_v55 = vsel %vm227_vm0, %v667_v35, %v630_v37  ;;  %2556 = vset.pattern.permute.xlu2 %v3174_v52  ;;  %2559 = vset.pattern.permute.xlu0 %v3174_v52  ;;  %v335_v38 = vrot.slane %v322_v57, 4  ;;  %v426_v48 = vsel %vm227_vm0, %v3043_v15, %v425_v47  ;;  %v625_v5 = vrot.slane %v3126_v28, 4 }
  0x5e   : > { %v650_v56 = vsel %vm227_vm0, %v610_v36, %v649_v23  ;;  %v402_v1 = vsel %vm227_vm0, %v3033_v0, %v401_v29  ;;  %v560_v63 = vsel %vm227_vm0, %v559_v62, %v522_v8  ;;  %v558_v4 = vsel %vm227_vm0, %v3113_v30, %v557_v14 }
  0x5f   : > { %v434_v42 = vperm.slane %v426_v48, %v2759_v26  ;;  %v336_v50 = vsel %vm227_vm0, %v335_v38, %v298_v16  ;;  %v658_v25 = vperm.slane %v650_v56, %v2759_v26  ;;  %v410_v15 = vperm.slane %v402_v1, %v2759_v26 }
  0x60   : > { %v626_v28 = vsel %vm227_vm0, %v3129_v9, %v625_v5  ;;  %v3213_v9 = vld [vmem:[%s4223_s1] sm:$0xff]  ;;  %v337_v34 = vrot.slane %v298_v16, 4  ;;  %v561_v36 = vrot.slane %v522_v8, 4  ;;  %v934_v46 = vperm.slane %v3230_v3, 0 }
  0x61   : > { %749 = vrot.lane.b32.xlu1 %v670_v39, %s2655_s5  ;;  %733 = vrot.lane.b32.xlu0 %v668_v55, %s2654_s4  ;;  %v449_v0 = vrot.slane %v410_v15, 4  ;;  %v447_v30 = vrot.slane %v434_v42, 4  ;;  %v634_v7 = vperm.slane %v626_v28, %v2759_v26  ;;  %v671_v33 = vrot.slane %v658_v25, 4 }
  0x62   : > { %745 = vrot.lane.b32.xlu2 %v446_v2, %s2655_s5  ;;  %v830_v59 = vperm.slane %v3213_v9, 0  ;;  %v338_v58 = vsel %vm227_vm0, %v322_v57, %v337_v34  ;;  %v562_v31 = vsel %vm227_vm0, %v546_v43, %v561_v36  ;;  %v843_v51 = vperm.slane %v3213_v9, 1  ;;  %v3263_v2 = vld [vmem:[%s4223_s1 + $0x18] sm:$0xff] }
  0x63   : > { %v450_v32 = vsel %vm227_vm0, %v434_v42, %v449_v0  ;;  %v448_v10 = vsel %vm227_vm0, %v447_v30, %v410_v15  ;;  %v672_v11 = vsel %vm227_vm0, %v671_v33, %v634_v7  ;;  %v673_v37 = vrot.slane %v634_v7, 4 }
  0x64   : > { %v869_v60 = vperm.slane %v3213_v9, 3  ;;  %v856_v61 = vperm.slane %v3213_v9, 2  ;;  %v999_v24 = vperm.slane %v3230_v3, 5  ;;  %v882_v41 = vperm.slane %v3213_v9, 4 }
  0x65   : > { %v674_v17 = vsel %vm227_vm0, %v658_v25, %v673_v37  ;;  %v1064_v13 = vperm.slane %v3243_v21, 2  ;;  %v895_v39 = vperm.slane %v3213_v9, 5  ;;  %v1129_v55 = vperm.slane %v3243_v21, 7 }
  0x66   : > { %v1194_v27 = vperm.slane %v3263_v2, 4  ;;  %v908_v8 = vperm.slane %v3213_v9, 6  ;;  %v921_v48 = vperm.slane %v3213_v9, 7  ;;  %v947_v42 = vperm.slane %v3230_v3, 1 }
  0x67   : > { %v547_v15 = vrot.slane %v2810_v53, 4  ;;  %v435_v28 = vrot.slane %v2991_v19, 4  ;;  %vm787_vm1 = vcmask 130048   ;;  %vm792_vm2 = vcmask 261120  }
  0x68   : > { %v960_v53 = vperm.slane %v3230_v3, 2  ;;  %vm797_vm3 = vcmask 392192   ;;  %vm802_vm4 = vcmask 523264   ;;  %v323_v9 = vrot.slane %v2868_v45, 4 }
  0x69   : > { %763 = vrot.lane.b32.xlu1 %v560_v63, %s2656_s6  ;;  %747 = vrot.lane.b32.xlu0 %v558_v4, %s2655_s5  ;;  %v548_v30 = vsel %vm227_vm0, %v547_v15, %v2801_v49  ;;  %v436_v33 = vsel %vm227_vm0, %v435_v28, %v2979_v20  ;;  %vm807_vm5 = vcmask 654336   ;;  %vm817_vm6 = vcmask 916480  }
  0x6a   : > { %759 = vrot.lane.b32.xlu2 %v336_v50, %s2656_s6  ;;  %v973_v50 = vperm.slane %v3230_v3, 3  ;;  %vm812_vm7 = vcmask 785408  }
  0x71   : > { %777 = vrot.lane.b32.xlu1 %v450_v32, %s2657_s7  ;;  %761 = vrot.lane.b32.xlu0 %v448_v10, %s2656_s6 }
  0x72   : > { %765 = vrot.lane.b32.xlu2 %v672_v11, %s2656_s6 }
  0x79   : > { %835 = vperm.xlu1 %2555, %v830_v59   ;;  %775 = vrot.lane.b32.xlu0 %v338_v58, %s2657_s7 }
  0x7a   : > { %779 = vrot.lane.b32.xlu2 %v562_v31, %s2657_s7  ;;  %v324_v31 = vsel %vm227_vm0, %v323_v9, %v2859_v40 }
  0x81   : > { %2557 = vset.pattern.permute.xlu1 %v3174_v52  ;;  %781 = vrot.lane.b32.xlu0 %v674_v17, %s2657_s7 }
  0x82   : > { %841 = vperm.xlu2 %2556, %v830_v59  }
  0x88   : > { %v3234_v54 = vpop.permute.xlu2 %695 }
  0x89   : > { %854 = vperm.xlu1 %2557, %v843_v51   ;;  %880 = vperm.xlu0 %2559, %v869_v60  }
  0x8a   : > { %2558 = vset.pattern.permute.xlu2 %v3163_v18 }
  0x91   : > { %867 = vperm.xlu1 %2557, %v856_v61   ;;  %945 = vperm.xlu0 %2559, %v934_v46  }
  0x92   : > { %861 = vperm.xlu2 %2558, %v856_v61   ;;  %v659_v61 = vrot.slane %v2938_v6, 4 }
  0x97   : > { %v684_v44 = vpop.permute.xlu1 %683 }
  0x98   : > { %v790_v19 = vsel %vm787_vm1, %v548_v30, %v684_v44 }
  0x99   : > { %2560 = vset.pattern.permute.xlu1 %v3163_v18  ;;  %1010 = vperm.xlu0 %2559, %v999_v24  }
  0x9a   : > { %874 = vperm.xlu2 %2558, %v869_v60  }
  0x9c   : > { %v3246_v35 = vpop.permute.xlu2 %697 }
  0xa0   : > { %v3258_v12 = vpop.permute.xlu0 %679 }
  0xa1   : > { %887 = vperm.xlu1 %2560, %v882_v41   ;;  %1075 = vperm.xlu0 %2559, %v1064_v13  }
  0xa2   : > { %2561 = vset.pattern.permute.xlu2 %v3174_v52 }
  0xa4   : > { %v3253_v43 = vpop.permute.xlu2 %711 }
  0xa9   : > { %900 = vperm.xlu1 %2560, %v895_v39   ;;  %1140 = vperm.xlu0 %2559, %v1129_v55  }
  0xaa   : > { %893 = vperm.xlu2 %2561, %v882_v41  }
  0xab   : > { %v3265_v57 = vpop.permute.xlu1 %685 }
  0xac   : > { %v3267_v47 = vpop.permute.xlu2 %717 }
  0xb1   : > { %2562 = vset.pattern.permute.xlu1 %v3174_v52  ;;  %1205 = vperm.xlu0 %2559, %v1194_v27  }
  0xb2   : > { %906 = vperm.xlu2 %2561, %v895_v39  }
  0xb3   : > { %v3273_v23 = vpop.permute.xlu1 %701  ;;  %v682_v29 = vpop.permute.xlu0 %681 }
  0xb4   : > { %v732_v62 = vpop.permute.xlu2 %731  ;;  %v789_v32 = vsel %vm787_vm1, %v436_v33, %v682_v29  ;;  %v1038_v33 = vperm.slane %v3243_v21, 0 }
  0xb5   : > { %v794_v20 = vsel %vm792_vm2, %v789_v32, %v3246_v35  ;;  %v1012_v32 = vperm.slane %v3230_v3, 6 }
  0xb9   : > { %919 = vperm.xlu1 %2562, %v908_v8   ;;  %2580 = vset.pattern.permute.xlu0 %v3163_v18 }
  0xba   : > { %2563 = vset.pattern.permute.xlu2 %v3163_v18 }
  0xbb   : > { %v716_v14 = vpop.permute.xlu1 %715  ;;  %v700_v16 = vpop.permute.xlu0 %699 }
  0xbc   : > { %v3278_v38 = vpop.permute.xlu2 %745  ;;  %v795_v10 = vsel %vm792_vm2, %v790_v19, %v700_v16 }
  0xbd   : > { %v800_v11 = vsel %vm797_vm3, %v795_v10, %v716_v14 }
  0xbe   : > { %v805_v36 = vsel %vm802_vm4, %v800_v11, %v732_v62 }
  0xc1   : > { %932 = vperm.xlu1 %2562, %v921_v48   ;;  %848 = vperm.xlu0 %2580, %v843_v51   ;;  %v788_v51 = vsel %vm787_vm1, %v324_v31, %v3258_v12 }
  0xc2   : > { %926 = vperm.xlu2 %2563, %v921_v48   ;;  %v793_v41 = vsel %vm792_vm2, %v788_v51, %v3234_v54 }
  0xc3   : > { %v730_v5 = vpop.permute.xlu1 %729  ;;  %v714_v56 = vpop.permute.xlu0 %713  ;;  %v798_v29 = vsel %vm797_vm3, %v793_v41, %v3253_v43 }
  0xc4   : > { %v3281_v1 = vpop.permute.xlu2 %759  ;;  %v799_v45 = vsel %vm797_vm3, %v794_v20, %v714_v56 }
  0xc5   : > { %v804_v60 = vsel %vm802_vm4, %v799_v45, %v730_v5  ;;  %v1025_v45 = vperm.slane %v3230_v3, 7 }
  0xc6   : > { %v809_v35 = vsel %vm807_vm5, %v804_v60, %v3278_v38 }
  0xc9   : > { %2564 = vset.pattern.permute.xlu1 %v3163_v18  ;;  %913 = vperm.xlu0 %2580, %v908_v8   ;;  %v4235_v8 = vld [vmem:[#allocation5_spill] sm:$0xff] }
  0xca   : > { %939 = vperm.xlu2 %2563, %v934_v46   ;;  %v660_v62 = vsel %vm227_vm0, %v659_v61, %v4235_v8 }
  0xcb   : > { %v744_v63 = vpop.permute.xlu1 %743  ;;  %v728_v4 = vpop.permute.xlu0 %727  ;;  %v791_v14 = vsel %vm787_vm1, %v660_v62, %v3265_v57 }
  0xcc   : > { %v3286_v25 = vpop.permute.xlu2 %765  ;;  %v803_v6 = vsel %vm802_vm4, %v798_v29, %v728_v4  ;;  %v796_v43 = vsel %vm792_vm2, %v791_v14, %v3273_v23  ;;  %v986_v23 = vperm.slane %v3230_v3, 4 }
  0xcd   : > { %v808_v54 = vsel %vm807_vm5, %v803_v6, %v744_v63 }
  0xce   : > { %v813_v48 = vsel %vm812_vm7, %v808_v54, %v3281_v1 }
  0xd1   : > { %952 = vperm.xlu1 %2564, %v947_v42   ;;  %978 = vperm.xlu0 %2580, %v973_v50  }
  0xd2   : > { %2565 = vset.pattern.permute.xlu2 %v3174_v52 }
  0xd3   : > { %v3291_v0 = vpop.permute.xlu1 %749  ;;  %v3295_v7 = vpop.permute.xlu0 %733 }
  0xd4   : > { %v780_v49 = vpop.permute.xlu2 %779 }
  0xd9   : > { %965 = vperm.xlu1 %2564, %v960_v53   ;;  %1043 = vperm.xlu0 %2580, %v1038_v33  }
  0xda   : > { %958 = vperm.xlu2 %2565, %v947_v42   ;;  %v801_v42 = vsel %vm797_vm3, %v796_v43, %v3267_v47  ;;  %v1103_v43 = vperm.slane %v3243_v21, 5 }
  0xdb   : > { %v764_v34 = vpop.permute.xlu1 %763  ;;  %v748_v59 = vpop.permute.xlu0 %747  ;;  %v806_v1 = vsel %vm802_vm4, %v801_v42, %v3295_v7 }
  0xdc   : > { %v810_v58 = vsel %vm807_vm5, %v805_v36, %v748_v59  ;;  %v3325_v40 = vpop.permute.xlu2 %841  ;;  %v811_v15 = vsel %vm807_vm5, %v806_v1, %v3291_v0  ;;  %v1077_v1 = vperm.slane %v3243_v21, 3 }
  0xdd   : > { %v815_v37 = vsel %vm812_vm7, %v810_v58, %v764_v34  ;;  %v816_v28 = vsel %vm812_vm7, %v811_v15, %v3286_v25 }
  0xde   : > { %v820_v17 = vsel %vm817_vm6, %v815_v37, %v780_v49  ;;  %v1696_v49 = vrot.slane %v3325_v40, 4 }
  0xdf   : > { %826 = vst [vmem:[%s3317_s28 + $0x20] sm:$0xff] %v820_v17 }
  0xe0   : > { %827 = vst [vmem:[%s3317_s28 + $0x28] sm:$0xff] %v820_v17 }
  0xe1   : > { %2566 = vset.pattern.permute.xlu1 %v3174_v52  ;;  %1108 = vperm.xlu0 %2580, %v1103_v43  }
  0xe2   : > { %971 = vperm.xlu2 %2565, %v960_v53  }
  0xe3   : > { %v778_v46 = vpop.permute.xlu1 %777  ;;  %v762_v44 = vpop.permute.xlu0 %761 }
  0xe4   : > { %v814_v39 = vsel %vm812_vm7, %v809_v35, %v762_v44 }
  0xe5   : > { %v819_v12 = vsel %vm817_vm6, %v814_v39, %v778_v46 }
  0xe6   : > { %824 = vst [vmem:[%s3317_s28 + $0x10] sm:$0xff] %v819_v12 }
  0xe7   : > { %825 = vst [vmem:[%s3317_s28 + $0x18] sm:$0xff] %v819_v12 }
  0xe9   : > { %984 = vperm.xlu1 %2566, %v973_v50  }
  0xea   : > { %2567 = vset.pattern.permute.xlu2 %v3163_v18 }
  0xeb   : > { %v836_v16 = vpop.permute.xlu1 %835  ;;  %v776_v38 = vpop.permute.xlu0 %775 }
  0xec   : > { %v1248_v5 = vrot.slane %v836_v16, 4  ;;  %v818_v56 = vsel %vm817_vm6, %v813_v48, %v776_v38  ;;  %v862_v4 = vpop.permute.xlu2 %861 }
  0xed   : > { %822 = vst [vmem:[%s3317_s28] sm:$0xff] %v818_v56  ;;  %v1246_v63 = vrot.slane %v862_v4, 4 }
  0xee   : > { %v3352_v57 = vsel %vm227_vm0, %v862_v4, %v1248_v5  ;;  %823 = vst [vmem:[%s3317_s28 + $0x8] sm:$0xff] %v818_v56 }
  0xef   : > { %v3361_v50 = vsel %vm227_vm0, %v1246_v63, %v836_v16  ;;  %v1051_v16 = vperm.slane %v3243_v21, 1 }
  0xf0   : > { %v1253_v15 = vperm.slane %v3361_v50, %v2750_v22 }
  0xf1   : > { %997 = vperm.xlu1 %2566, %v986_v23  }
  0xf2   : > { %991 = vperm.xlu2 %2567, %v986_v23  }
  0xf3   : > { %v782_v30 = vpop.permute.xlu0 %781 }
  0xf4   : > { %v821_v47 = vsel %vm817_vm6, %v816_v28, %v782_v30  ;;  %v3377_v11 = vpop.permute.xlu2 %874  ;;  %v1257_v28 = vperm.slane %v3352_v57, %v2750_v22 }
  0xf5   : > { %828 = vst [vmem:[%s3317_s28 + $0x30] sm:$0xff] %v821_v47 }
  0xf6   : > { %829 = vst [vmem:[%s3317_s28 + $0x38] sm:$0xff] %v821_v47 }
  0xf9   : > { %2568 = vset.pattern.permute.xlu1 %v3163_v18 }
  0xfa   : > { %1004 = vperm.xlu2 %2567, %v999_v24  }
  0xfb   : > { %v855_v7 = vpop.permute.xlu1 %854  ;;  %v881_v53 = vpop.permute.xlu0 %880 }
  0xfc   : > { %v1708_v0 = vrot.slane %v855_v7, 4  ;;  %v1706_v19 = vrot.slane %v881_v53, 4 }
  0xfe   : > { %v1709_v25 = vsel %vm227_vm0, %v881_v53, %v1708_v0  ;;  %v1707_v10 = vsel %vm227_vm0, %v1706_v19, %v855_v7  ;;  %v1308_v7 = vrot.slane %v1257_v28, 4  ;;  %v1258_v0 = vrot.slane %v3377_v11, 4 }
  0xff   : > { %v1717_v9 = vperm.slane %v1709_v25, %v2750_v22  ;;  %v1713_v24 = vperm.slane %v1707_v10, %v2750_v22 }
 0x101   : > { %1017 = vperm.xlu1 %2568, %v1012_v32   ;;  %v1754_v58 = vrot.slane %v1717_v9, 4  ;;  %v1742_v17 = vrot.slane %v1713_v24, 4 }
 0x102   : > { %2569 = vset.pattern.permute.xlu2 %v3174_v52 }
 0x103   : > { %v868_v20 = vpop.permute.xlu1 %867  ;;  %v3384_v59 = vpop.permute.xlu0 %945 }
 0x104   : > { %v1694_v34 = vrot.slane %v868_v20, 4  ;;  %v1697_v36 = vsel %vm227_vm0, %v868_v20, %v1696_v49  ;;  %v894_v41 = vpop.permute.xlu2 %893  ;;  %v1808_v50 = vrot.slane %v3384_v59, 4 }
 0x105   : > { %v1705_v31 = vperm.slane %v1697_v36, %v2750_v22  ;;  %v1720_v5 = vrot.slane %v894_v41, 4 }
 0x106   : > { %v1695_v37 = vsel %vm227_vm0, %v1694_v34, %v3325_v40 }
 0x107   : > { %v1701_v51 = vperm.slane %v1695_v37, %v2750_v22  ;;  %v1755_v60 = vsel %vm227_vm0, %v1754_v58, %v1705_v31  ;;  %v1756_v46 = vrot.slane %v1705_v31, 4 }
 0x108   : > { %v3431_v19 = vperm.slane %v1755_v60, %v2759_v26 }
 0x109   : > { %v1744_v61 = vrot.slane %v1701_v51, 4  ;;  %1030 = vperm.xlu1 %2568, %v1025_v45   ;;  %v1743_v35 = vsel %vm227_vm0, %v1742_v17, %v1701_v51  ;;  %v3394_v44 = vsel %vm227_vm0, %v1717_v9, %v1756_v46  ;;  %v1090_v9 = vperm.slane %v3243_v21, 4 }
 0x10a   : > { %1023 = vperm.xlu2 %2569, %v1012_v32   ;;  %v3436_v32 = vperm.slane %v1743_v35, %v2759_v26 }
 0x10b   : > { %v1745_v3 = vsel %vm227_vm0, %v1713_v24, %v1744_v61  ;;  %v3397_v39 = vpop.permute.xlu0 %1010 }
 0x10c   : > { %v907_v40 = vpop.permute.xlu2 %906  ;;  %v1753_v24 = vperm.slane %v1745_v3, %v2759_v26 }
 0x111   : > { %2570 = vset.pattern.permute.xlu1 %v3174_v52 }
 0x112   : > { %1036 = vperm.xlu2 %2569, %v1025_v45  }
 0x113   : > { %v3400_v12 = vpop.permute.xlu1 %887  ;;  %v3402_v29 = vpop.permute.xlu0 %1075 }
 0x119   : > { %1049 = vperm.xlu1 %2570, %v1038_v33   ;;  %v1732_v33 = vrot.slane %v907_v40, 4 }
 0x11a   : > { %2571 = vset.pattern.permute.xlu2 %v3163_v18 }
 0x11b   : > { %v901_v8 = vpop.permute.xlu1 %900  ;;  %v3409_v48 = vpop.permute.xlu0 %1140 }
 0x11c   : > { %v1284_v62 = vrot.slane %v901_v8, 4  ;;  %v927_v6 = vpop.permute.xlu2 %926 }
 0x11d   : > { %v1282_v54 = vrot.slane %v927_v6, 4 }
 0x11e   : > { %v1285_v14 = vsel %vm227_vm0, %v927_v6, %v1284_v62  ;;  %v3456_v62 = vperm.slane %v3394_v44, %v2759_v26 }
 0x11f   : > { %v1283_v38 = vsel %vm227_vm0, %v1282_v54, %v901_v8  ;;  %v1293_v45 = vperm.slane %v1285_v14, %v2750_v22  ;;  %v1792_v8 = vrot.slane %v3436_v32, 4 }
 0x120   : > { %v1289_v6 = vperm.slane %v1283_v38, %v2750_v22 }
 0x121   : > { %1062 = vperm.xlu1 %2570, %v1051_v16   ;;  %v1330_v44 = vrot.slane %v1293_v45, 4 }
 0x122   : > { %1056 = vperm.xlu2 %2571, %v1051_v16  }
 0x123   : > { %v3414_v56 = vpop.permute.xlu0 %1205 }
 0x124   : > { %v3418_v63 = vpop.permute.xlu2 %939 }
 0x129   : > { %2572 = vset.pattern.permute.xlu1 %v3163_v18 }
 0x12a   : > { %1069 = vperm.xlu2 %2571, %v1064_v13   ;;  %v1296_v13 = vrot.slane %v1253_v15, 4 }
 0x12b   : > { %v920_v4 = vpop.permute.xlu1 %919 }
 0x12c   : > { %v1718_v42 = vrot.slane %v920_v4, 4  ;;  %v1721_v23 = vsel %vm227_vm0, %v920_v4, %v1720_v5  ;;  %v1796_v4 = vrot.slane %v1753_v24, 4 }
 0x12d   : > { %v1729_v47 = vperm.slane %v1721_v23, %v2750_v22 }
 0x12e   : > { %v1719_v30 = vsel %vm227_vm0, %v1718_v42, %v894_v41  ;;  %v1272_v42 = vrot.slane %v3400_v12, 4 }
 0x12f   : > { %v1725_v53 = vperm.slane %v1719_v30, %v2750_v22  ;;  %v1780_v20 = vrot.slane %v1729_v47, 4 }
 0x131   : > { %1082 = vperm.xlu1 %2572, %v1077_v1   ;;  %v1768_v37 = vrot.slane %v1725_v53, 4 }
 0x132   : > { %2573 = vset.pattern.permute.xlu2 %v3174_v52 }
 0x133   : > { %v933_v57 = vpop.permute.xlu1 %932  ;;  %v849_v25 = vpop.permute.xlu0 %848 }
 0x134   : > { %v1730_v10 = vrot.slane %v933_v57, 4  ;;  %v1733_v49 = vsel %vm227_vm0, %v933_v57, %v1732_v33  ;;  %v1259_v34 = vsel %vm227_vm0, %v1258_v0, %v849_v25  ;;  %v1260_v36 = vrot.slane %v849_v25, 4  ;;  %v3443_v31 = vpop.permute.xlu2 %958 }
 0x135   : > { %v1741_v58 = vperm.slane %v1733_v49, %v2750_v22  ;;  %v1265_v17 = vperm.slane %v1259_v34, %v2750_v22 }
 0x136   : > { %v1731_v51 = vsel %vm227_vm0, %v1730_v10, %v907_v40  ;;  %v1261_v60 = vsel %vm227_vm0, %v3377_v11, %v1260_v36 }
 0x137   : > { %v1737_v46 = vperm.slane %v1731_v51, %v2750_v22  ;;  %v1778_v61 = vrot.slane %v1741_v58, 4  ;;  %v1781_v41 = vsel %vm227_vm0, %v1741_v58, %v1780_v20  ;;  %v1269_v35 = vperm.slane %v1261_v60, %v2750_v22 }
 0x138   : > { %v1294_v3 = vrot.slane %v1265_v17, 4  ;;  %v1297_v38 = vsel %vm227_vm0, %v1265_v17, %v1296_v13 }
 0x139   : > { %v1766_v40 = vrot.slane %v1737_v46, 4  ;;  %1095 = vperm.xlu1 %2572, %v1090_v9   ;;  %v1769_v11 = vsel %vm227_vm0, %v1737_v46, %v1768_v37  ;;  %v1779_v54 = vsel %vm227_vm0, %v1778_v61, %v1729_v47  ;;  %v1306_v14 = vrot.slane %v1269_v35, 4 }
 0x13a   : > { %v1309_v16 = vsel %vm227_vm0, %v1269_v35, %v1308_v7  ;;  %v1777_v5 = vperm.slane %v1769_v11, %v2759_v26  ;;  %1088 = vperm.xlu2 %2573, %v1077_v1   ;;  %v1295_v33 = vsel %vm227_vm0, %v1294_v3, %v1253_v15  ;;  %v1318_v7 = vrot.slane %v1289_v6, 4 }
 0x13b   : > { %v1767_v23 = vsel %vm227_vm0, %v1766_v40, %v1725_v53  ;;  %v914_v30 = vpop.permute.xlu0 %913  ;;  %v1307_v0 = vsel %vm227_vm0, %v1306_v14, %v1257_v28  ;;  %v1301_v34 = vperm.slane %v1295_v33, %v2759_v26  ;;  %v1305_v36 = vperm.slane %v1297_v38, %v2759_v26 }
 0x13c   : > { %v1794_v47 = vrot.slane %v1777_v5, 4  ;;  %v3471_v57 = vsel %vm227_vm0, %v1777_v5, %v1796_v4  ;;  %v1270_v25 = vrot.slane %v914_v30, 4  ;;  %v1273_v10 = vsel %vm227_vm0, %v914_v30, %v1272_v42  ;;  %v972_v49 = vpop.permute.xlu2 %971 }
 0x13d   : > { %v1313_v1 = vperm.slane %v1307_v0, %v2759_v26  ;;  %v1281_v13 = vperm.slane %v1273_v10, %v2750_v22  ;;  %v1806_v20 = vrot.slane %v972_v49, 4  ;;  %v3477_v53 = vsel %vm227_vm0, %v972_v49, %v1808_v50 }
 0x13e   : > { %v1773_v15 = vperm.slane %v1767_v23, %v2759_v26  ;;  %v1271_v28 = vsel %vm227_vm0, %v1270_v25, %v3400_v12  ;;  %v3485_v58 = vsel %vm227_vm0, %v1794_v47, %v1753_v24  ;;  %v1317_v60 = vperm.slane %v1309_v16, %v2759_v26 }
 0x13f   : > { %v1277_v37 = vperm.slane %v1271_v28, %v2750_v22  ;;  %v1331_v17 = vsel %vm227_vm0, %v1330_v44, %v1281_v13  ;;  %v1332_v51 = vrot.slane %v1281_v13, 4  ;;  %v3491_v50 = vsel %vm227_vm0, %v1806_v20, %v3384_v59 }
 0x140   : > { %v1337_v12 = vperm.slane %v1331_v17, %v2759_v26  ;;  %v1352_v46 = vrot.slane %v1313_v1, 4  ;;  %v1789_v61 = vperm.slane %v1781_v41, %v2759_v26  ;;  %v3500_v40 = vsel %vm227_vm0, %v1773_v15, %v1792_v8 }
 0x141   : > { %2574 = vset.pattern.permute.xlu1 %v3174_v52  ;;  %v1320_v24 = vrot.slane %v1277_v37, 4  ;;  %v1319_v35 = vsel %vm227_vm0, %v1318_v7, %v1277_v37  ;;  %v1333_v3 = vsel %vm227_vm0, %v1293_v45, %v1332_v51  ;;  %v1344_v14 = vrot.slane %v1301_v34, 4 }
 0x142   : > { %1101 = vperm.xlu2 %2573, %v1090_v9   ;;  %v1325_v11 = vperm.slane %v1319_v35, %v2759_v26  ;;  %v1348_v16 = vrot.slane %v1305_v36, 4  ;;  %v1350_v5 = vrot.slane %v1337_v12, 4  ;;  %v1341_v42 = vperm.slane %v1333_v3, %v2759_v26 }
 0x143   : > { %v3504_v59 = vpop.permute.xlu1 %952  ;;  %v1321_v4 = vsel %vm227_vm0, %v1289_v6, %v1320_v24  ;;  %v3511_v45 = vsel %vm227_vm0, %v1337_v12, %v1352_v46  ;;  %v3513_v8 = vpop.permute.xlu0 %978  ;;  %v1785_v23 = vperm.slane %v1779_v54, %v2759_v26  ;;  %v1168_v6 = vperm.slane %v3263_v2, 2 }
 0x144   : > { %v1372_v41 = vrot.slane %v3504_v59, 4  ;;  %v3516_v9 = vsel %vm227_vm0, %v1325_v11, %v1344_v14  ;;  %v1342_v44 = vrot.slane %v1325_v11, 4  ;;  %v1329_v38 = vperm.slane %v1321_v4, %v2759_v26 }
 0x145   : > { %v3524_v33 = vsel %vm227_vm0, %v1350_v5, %v1313_v1  ;;  %v1356_v0 = vrot.slane %v1317_v60, 4  ;;  %v1790_v25 = vrot.slane %v1773_v15, 4  ;;  %v1800_v10 = vrot.slane %v3431_v19, 4  ;;  %1173 = vperm.xlu0 %2580, %v1168_v6  }
 0x146   : > { %v1373_v30 = vsel %vm227_vm0, %v3513_v8, %v1372_v41  ;;  %v1346_v47 = vrot.slane %v1329_v38, 4  ;;  %v3527_v7 = vsel %vm227_vm0, %v1329_v38, %v1348_v16  ;;  %v3533_v54 = vsel %vm227_vm0, %v1342_v44, %v1301_v34 }
 0x147   : > { %v1354_v49 = vrot.slane %v1341_v42, 4  ;;  %v3536_v13 = vsel %vm227_vm0, %v1341_v42, %v1356_v0  ;;  %v1804_v1 = vrot.slane %v3456_v62, 4  ;;  %v1381_v20 = vperm.slane %v1373_v30, %v2750_v22 }
 0x148   : > { %v3543_v15 = vsel %vm227_vm0, %v1346_v47, %v1305_v36  ;;  %v3546_v28 = vsel %vm227_vm0, %v1785_v23, %v1800_v10  ;;  %v1798_v37 = vrot.slane %v1785_v23, 4  ;;  %v1360_v34 = vrot.slane %v3418_v63, 4 }
 0x149   : > { %1114 = vperm.xlu1 %2574, %v1103_v43   ;;  %v3550_v17 = vsel %vm227_vm0, %v1354_v49, %v1317_v60  ;;  %v1802_v51 = vrot.slane %v1789_v61, 4  ;;  %v3553_v12 = vsel %vm227_vm0, %v1789_v61, %v1804_v1  ;;  %v3562_v36 = vsel %vm227_vm0, %v1790_v25, %v3436_v32 }
 0x14a   : > { %4236 = vst [vmem:[#allocation5_spill] sm:$0xff] %v3553_v12  ;;  %2575 = vset.pattern.permute.xlu2 %v3163_v18  ;;  %v3558_v43 = vsel %vm227_vm0, %v1798_v37, %v3431_v19  ;;  %v1418_v35 = vrot.slane %v1381_v20, 4  ;;  %v1116_v3 = vperm.slane %v3243_v21, 6  ;;  %v1233_v14 = vperm.slane %v3263_v2, 7 }
 0x14b   : > { %v966_v46 = vpop.permute.xlu1 %965  ;;  %4237 = vst [vmem:[#allocation6_spill] sm:$0xff] %v3562_v36  ;;  %v3567_v60 = vsel %vm227_vm0, %v1802_v51, %v3456_v62  ;;  %v1817_v62 = vperm.slane %v3477_v53, %v2750_v22  ;;  %v1820_v5 = vrot.slane %v3443_v31, 4  ;;  %v1813_v41 = vperm.slane %v3491_v50, %v2750_v22 }
 0x14c   : > { %v1361_v24 = vsel %vm227_vm0, %v966_v46, %v1360_v34  ;;  %4238 = vst [vmem:[#allocation7_spill] sm:$0xff] %v3567_v60  ;;  %v3575_v16 = vpop.permute.xlu2 %991  ;;  %v1142_v0 = vperm.slane %v3263_v2, 0 }
 0x14d   : > { %v1369_v61 = vperm.slane %v1361_v24, %v2750_v22  ;;  %1238 = vperm.xlu0 %2580, %v1233_v14   ;;  %v1868_v4 = vrot.slane %v1817_v62, 4  ;;  %v1856_v53 = vrot.slane %v1813_v41, 4 }
 0x14f   : > { %v3572_v11 = vsel %vm227_vm0, %v1418_v35, %v1369_v61  ;;  %v1420_v19 = vrot.slane %v1369_v61, 4  ;;  %v1358_v35 = vrot.slane %v966_v46, 4 }
 0x151   : > { %1127 = vperm.xlu1 %2574, %v1116_v3   ;;  %v3580_v32 = vsel %vm227_vm0, %v1381_v20, %v1420_v19  ;;  %v1844_v19 = vrot.slane %v3397_v39, 4 }
 0x152   : > { %1121 = vperm.xlu2 %2575, %v1116_v3  }
 0x154   : > { %v3591_v42 = vpop.permute.xlu2 %1004 }
 0x155   : > { %2584 = vset.pattern.permute.xlu0 %v3174_v52 }
 0x159   : > { %2576 = vset.pattern.permute.xlu1 %v3163_v18 }
 0x15a   : > { %1134 = vperm.xlu2 %2575, %v1129_v55  }
 0x15b   : > { %v985_v44 = vpop.permute.xlu1 %984 }
 0x15c   : > { %v1818_v38 = vrot.slane %v985_v44, 4  ;;  %v1821_v23 = vsel %vm227_vm0, %v985_v44, %v1820_v5 }
 0x15d   : > { %v1829_v30 = vperm.slane %v1821_v23, %v2750_v22 }
 0x15e   : > { %v1819_v50 = vsel %vm227_vm0, %v1818_v38, %v3443_v31  ;;  %v1155_v31 = vperm.slane %v3263_v2, 1 }
 0x15f   : > { %v1825_v47 = vperm.slane %v1819_v50, %v2750_v22  ;;  %v1866_v25 = vrot.slane %v1829_v30, 4  ;;  %v1869_v21 = vsel %vm227_vm0, %v1829_v30, %v1868_v4 }
 0x160   : > { %v1877_v46 = vperm.slane %v1869_v21, %v2759_v26 }
 0x161   : > { %v1854_v55 = vrot.slane %v1825_v47, 4  ;;  %1147 = vperm.xlu1 %2576, %v1142_v0   ;;  %v1857_v10 = vsel %vm227_vm0, %v1825_v47, %v1856_v53  ;;  %v1867_v49 = vsel %vm227_vm0, %v1866_v25, %v1817_v62  ;;  %v1359_v62 = vsel %vm227_vm0, %v1358_v35, %v3418_v63 }
 0x162   : > { %2577 = vset.pattern.permute.xlu2 %v3174_v52  ;;  %v3614_v38 = vperm.slane %v1359_v62, %v2750_v22  ;;  %v1865_v63 = vperm.slane %v1857_v10, %v2759_v26 }
 0x163   : > { %v998_v1 = vpop.permute.xlu1 %997  ;;  %v1855_v20 = vsel %vm227_vm0, %v1854_v55, %v1813_v41  ;;  %v1370_v41 = vrot.slane %v3513_v8, 4  ;;  %v1384_v8 = vrot.slane %v3575_v16, 4 }
 0x164   : > { %v1832_v37 = vrot.slane %v998_v1, 4  ;;  %v1024_v34 = vpop.permute.xlu2 %1023  ;;  %v1861_v10 = vperm.slane %v1855_v20, %v2759_v26 }
 0x165   : > { %v1830_v51 = vrot.slane %v1024_v34, 4 }
 0x166   : > { %v1833_v24 = vsel %vm227_vm0, %v1024_v34, %v1832_v37  ;;  %v1408_v37 = vrot.slane %v3614_v38, 4  ;;  %v1916_v34 = vrot.slane %v1877_v46, 4 }
 0x167   : > { %v1831_v61 = vsel %vm227_vm0, %v1830_v51, %v998_v1  ;;  %v1841_v3 = vperm.slane %v1833_v24, %v2750_v22  ;;  %v1873_v1 = vperm.slane %v1867_v49, %v2759_v26 }
 0x168   : > { %v1837_v5 = vperm.slane %v1831_v61, %v2750_v22  ;;  %v1908_v61 = vrot.slane %v1865_v63, 4 }
 0x169   : > { %1160 = vperm.xlu1 %2576, %v1155_v31   ;;  %v1892_v4 = vrot.slane %v1841_v3, 4 }
 0x16a   : > { %1153 = vperm.xlu2 %2577, %v1142_v0   ;;  %v1880_v30 = vrot.slane %v1837_v5, 4  ;;  %v1371_v0 = vsel %vm227_vm0, %v1370_v41, %v3504_v59 }
 0x16c   : > { %v1037_v44 = vpop.permute.xlu2 %1036 }
 0x16d   : > { %v1842_v23 = vrot.slane %v1037_v44, 4  ;;  %v1845_v53 = vsel %vm227_vm0, %v1037_v44, %v1844_v19 }
 0x16e   : > { %v1853_v50 = vperm.slane %v1845_v53, %v2750_v22  ;;  %v1904_v53 = vrot.slane %v1861_v10, 4 }
 0x16f   : > { %v1843_v47 = vsel %vm227_vm0, %v1842_v23, %v3397_v39 }
 0x170   : > { %v1849_v25 = vperm.slane %v1843_v47, %v2750_v22  ;;  %v1890_v55 = vrot.slane %v1853_v50, 4  ;;  %v1893_v21 = vsel %vm227_vm0, %v1853_v50, %v1892_v4  ;;  %v1912_v4 = vrot.slane %v1873_v1, 4 }
 0x171   : > { %2578 = vset.pattern.permute.xlu1 %v3174_v52  ;;  %v1901_v59 = vperm.slane %v1893_v21, %v2759_v26  ;;  %v1377_v50 = vperm.slane %v1371_v0, %v2750_v22 }
 0x172   : > { %v1878_v51 = vrot.slane %v1849_v25, 4  ;;  %1166 = vperm.xlu2 %2577, %v1155_v31   ;;  %v1881_v39 = vsel %vm227_vm0, %v1849_v25, %v1880_v30  ;;  %v1891_v35 = vsel %vm227_vm0, %v1890_v55, %v1841_v3 }
 0x173   : > { %v1018_v24 = vpop.permute.xlu1 %1017  ;;  %v1889_v49 = vperm.slane %v1881_v39, %v2759_v26  ;;  %v1897_v41 = vperm.slane %v1891_v35, %v2759_v26  ;;  %v3639_v44 = vsel %vm227_vm0, %v1901_v59, %v1916_v34  ;;  %v1914_v31 = vrot.slane %v1901_v59, 4 }
 0x174   : > { %v1382_v19 = vrot.slane %v1018_v24, 4  ;;  %v1385_v62 = vsel %vm227_vm0, %v1018_v24, %v1384_v8  ;;  %v1879_v20 = vsel %vm227_vm0, %v1878_v51, %v1837_v5  ;;  %4239 = vst [vmem:[#allocation8_spill] sm:$0xff] %v3639_v44  ;;  %v1396_v34 = vrot.slane %v3591_v42, 4 }
 0x175   : > { %v1885_v23 = vperm.slane %v1879_v20, %v2759_v26  ;;  %v1906_v30 = vrot.slane %v1889_v49, 4  ;;  %v1910_v3 = vrot.slane %v1897_v41, 4  ;;  %v3646_v47 = vsel %vm227_vm0, %v1889_v49, %v1908_v61 }
 0x176   : > { %v1383_v8 = vsel %vm227_vm0, %v1382_v19, %v3575_v16  ;;  %v3649_v5 = vsel %vm227_vm0, %v1897_v41, %v1912_v4  ;;  %v1393_v0 = vperm.slane %v1385_v62, %v2750_v22  ;;  %v3664_v16 = vsel %vm227_vm0, %v1914_v31, %v1877_v46 }
 0x177   : > { %v1902_v25 = vrot.slane %v1885_v23, 4  ;;  %v3652_v55 = vsel %vm227_vm0, %v1885_v23, %v1904_v53  ;;  %v3655_v21 = vsel %vm227_vm0, %v1906_v30, %v1865_v63  ;;  %v3658_v59 = vsel %vm227_vm0, %v1910_v3, %v1873_v1  ;;  %4240 = vst [vmem:[#allocation9_spill] sm:$0xff] %v3664_v16 }
 0x178   : > { %v1409_v51 = vsel %vm227_vm0, %v1377_v50, %v1408_v37  ;;  %v1389_v63 = vperm.slane %v1383_v8, %v2750_v22  ;;  %v1444_v46 = vrot.slane %v1393_v0, 4  ;;  %v1425_v49 = vperm.slane %v3572_v11, %v2759_v26 }
 0x179   : > { %1179 = vperm.xlu1 %2578, %v1168_v6   ;;  %v3669_v24 = vsel %vm227_vm0, %v1902_v25, %v1861_v10  ;;  %v1429_v6 = vperm.slane %v3580_v32, %v2759_v26  ;;  %v3680_v37 = vperm.slane %v1409_v51, %v2759_v26  ;;  %v1181_v10 = vperm.slane %v3263_v2, 3 }
 0x17a   : > { %4241 = vst [vmem:[#allocation10_spill] sm:$0xff] %v3669_v24  ;;  %2579 = vset.pattern.permute.xlu2 %v3163_v18  ;;  %v1432_v41 = vrot.slane %v1389_v63, 4  ;;  %v1406_v31 = vrot.slane %v1377_v50, 4  ;;  %v1044_v50 = vpop.permute.xlu0 %1043 }
 0x17b   : > { %v1031_v1 = vpop.permute.xlu1 %1030  ;;  %v1468_v53 = vrot.slane %v1429_v6, 4  ;;  %v1460_v8 = vrot.slane %v3680_v37, 4 }
 0x17c   : > { %v1394_v39 = vrot.slane %v1031_v1, 4  ;;  %v1397_v35 = vsel %vm227_vm0, %v1031_v1, %v1396_v34  ;;  %v3677_v19 = vpop.permute.xlu2 %1056  ;;  %v1407_v1 = vsel %vm227_vm0, %v1406_v31, %v3614_v38 }
 0x17d   : > { %v1405_v61 = vperm.slane %v1397_v35, %v2750_v22  ;;  %v1464_v35 = vrot.slane %v1425_v49, 4 }
 0x17e   : > { %v1395_v62 = vsel %vm227_vm0, %v1394_v39, %v3591_v42 }
 0x17f   : > { %v1401_v20 = vperm.slane %v1395_v62, %v2750_v22  ;;  %v1442_v32 = vrot.slane %v1405_v61, 4  ;;  %v1445_v4 = vsel %vm227_vm0, %v1405_v61, %v1444_v46  ;;  %v1472_v46 = vrot.slane %v1044_v50, 4 }
 0x180   : > { %v1453_v23 = vperm.slane %v1445_v4, %v2759_v26 }
 0x181   : > { %v1430_v30 = vrot.slane %v1401_v20, 4  ;;  %1192 = vperm.xlu1 %2578, %v1181_v10   ;;  %v1433_v3 = vsel %vm227_vm0, %v1401_v20, %v1432_v41  ;;  %v1443_v42 = vsel %vm227_vm0, %v1442_v32, %v1393_v0 }
 0x182   : > { %v3694_v11 = vperm.slane %v1433_v3, %v2759_v26  ;;  %v1449_v25 = vperm.slane %v1443_v42, %v2759_v26  ;;  %v1466_v34 = vrot.slane %v1453_v23, 4  ;;  %v3698_v51 = vsel %vm227_vm0, %v1453_v23, %v1468_v53  ;;  %1186 = vperm.xlu2 %2579, %v1181_v10  }
 0x183   : > { %v1431_v39 = vsel %vm227_vm0, %v1430_v30, %v1389_v63  ;;  %v3718_v63 = vperm.slane %v1407_v1, %v2759_v26  ;;  %v1207_v53 = vperm.slane %v3263_v2, 5  ;;  %v1918_v30 = vrot.slane %v3402_v29, 4 }
 0x184   : > { %v3704_v0 = vperm.slane %v1431_v39, %v2759_v26  ;;  %v3708_v61 = vsel %vm227_vm0, %v3694_v11, %v1460_v8  ;;  %v1070_v62 = vpop.permute.xlu2 %1069  ;;  %v3711_v41 = vsel %vm227_vm0, %v1449_v25, %v1464_v35  ;;  %v1462_v10 = vrot.slane %v1449_v25, 4 }
 0x185   : > { %v3714_v20 = vsel %vm227_vm0, %v1466_v34, %v1429_v6  ;;  %v1473_v38 = vsel %vm227_vm0, %v1070_v62, %v1472_v46  ;;  %v1220_v34 = vperm.slane %v3263_v2, 6 }
 0x186   : > { %v1454_v32 = vrot.slane %v3704_v0, 4  ;;  %v3722_v4 = vsel %vm227_vm0, %v1462_v10, %v1425_v49 }
 0x188   : > { %v3726_v31 = vsel %vm227_vm0, %v1454_v32, %v3718_v63 }
 0x189   : > { %4242 = vst [vmem:[#allocation11_spill] sm:$0xff] %v3726_v31  ;;  %2581 = vset.pattern.permute.xlu1 %v3163_v18 }
 0x18a   : > { %1199 = vperm.xlu2 %2579, %v1194_v27  }
 0x18b   : > { %v1050_v6 = vpop.permute.xlu1 %1049 }
 0x18c   : > { %v1920_v23 = vrot.slane %v1050_v6, 4  ;;  %v1919_v49 = vsel %vm227_vm0, %v1918_v30, %v1050_v6  ;;  %v1470_v30 = vrot.slane %v1070_v62, 4 }
 0x18d   : > { %v1925_v27 = vperm.slane %v1919_v49, %v2750_v22 }
 0x18e   : > { %v1921_v3 = vsel %vm227_vm0, %v3402_v29, %v1920_v23 }
 0x18f   : > { %v1929_v8 = vperm.slane %v1921_v3, %v2750_v22  ;;  %v1968_v10 = vrot.slane %v1925_v27, 4 }
 0x191   : > { %1212 = vperm.xlu1 %2581, %v1207_v53   ;;  %v1980_v35 = vrot.slane %v1929_v8, 4 }
 0x192   : > { %2582 = vset.pattern.permute.xlu2 %v3174_v52 }
 0x193   : > { %v1063_v18 = vpop.permute.xlu1 %1062 }
 0x194   : > { %v1932_v42 = vrot.slane %v1063_v18, 4  ;;  %v1089_v25 = vpop.permute.xlu2 %1088 }
 0x195   : > { %v1930_v1 = vrot.slane %v1089_v25, 4 }
 0x196   : > { %v1933_v39 = vsel %vm227_vm0, %v1089_v25, %v1932_v42 }
 0x197   : > { %v1941_v29 = vperm.slane %v1933_v39, %v2750_v22  ;;  %v1931_v46 = vsel %vm227_vm0, %v1930_v1, %v1063_v18  ;;  %v1471_v18 = vsel %vm227_vm0, %v1470_v30, %v1044_v50  ;;  %v1481_v1 = vperm.slane %v1473_v38, %v2750_v22 }
 0x198   : > { %v1937_v32 = vperm.slane %v1931_v46, %v2750_v22  ;;  %v1484_v39 = vrot.slane %v3677_v19, 4 }
 0x199   : > { %v1978_v6 = vrot.slane %v1941_v29, 4  ;;  %1225 = vperm.xlu1 %2581, %v1220_v34   ;;  %v3745_v23 = vsel %vm227_vm0, %v1941_v29, %v1980_v35  ;;  %v1477_v35 = vperm.slane %v1471_v18, %v2750_v22 }
 0x19a   : > { %1218 = vperm.xlu2 %2582, %v1207_v53   ;;  %v1966_v3 = vrot.slane %v1937_v32, 4  ;;  %v3748_v49 = vsel %vm227_vm0, %v1937_v32, %v1968_v10  ;;  %v1532_v53 = vrot.slane %v1481_v1, 4 }
 0x19b   : > { %v3751_v42 = vsel %vm227_vm0, %v1978_v6, %v1929_v8 }
 0x19c   : > { %v3754_v25 = vsel %vm227_vm0, %v1966_v3, %v1925_v27  ;;  %v3761_v62 = vpop.permute.xlu2 %1101  ;;  %v1520_v27 = vrot.slane %v1477_v35, 4 }
 0x1a1   : > { %2583 = vset.pattern.permute.xlu1 %v3174_v52 }
 0x1a2   : > { %1231 = vperm.xlu2 %2582, %v1220_v34  }
 0x1a3   : > { %v1083_v29 = vpop.permute.xlu1 %1082 }
 0x1a4   : > { %v1482_v8 = vrot.slane %v1083_v29, 4  ;;  %v1485_v46 = vsel %vm227_vm0, %v1083_v29, %v1484_v39  ;;  %v1456_v29 = vrot.slane %v3718_v63, 4 }
 0x1a5   : > { %v1493_v10 = vperm.slane %v1485_v46, %v2750_v22 }
 0x1a6   : > { %v1483_v50 = vsel %vm227_vm0, %v1482_v8, %v3677_v19  ;;  %v1109_v8 = vpop.permute.xlu0 %1108  ;;  %v1457_v2 = vsel %vm227_vm0, %v3704_v0, %v1456_v29 }
 0x1a7   : > { %v1489_v38 = vperm.slane %v1483_v50, %v2750_v22  ;;  %v1530_v32 = vrot.slane %v1493_v10, 4  ;;  %v1533_v6 = vsel %vm227_vm0, %v1493_v10, %v1532_v53 }
 0x1a9   : > { %1244 = vperm.xlu1 %2583, %v1233_v14   ;;  %v1521_v52 = vsel %vm227_vm0, %v1489_v38, %v1520_v27  ;;  %v1531_v34 = vsel %vm227_vm0, %v1530_v32, %v1481_v1  ;;  %v1518_v1 = vrot.slane %v1489_v38, 4 }
 0x1aa   : > { %2146 = vrot.lane.b32.xlu2 %v3516_v9, %s2651_s27  ;;  %v1508_v9 = vrot.slane %v1109_v8, 4  ;;  %v1537_v38 = vperm.slane %v1531_v34, %v2759_v26 }
 0x1ab   : > { %v1096_v30 = vpop.permute.xlu1 %1095  ;;  %v1519_v63 = vsel %vm227_vm0, %v1518_v1, %v1477_v35 }
 0x1ac   : > { %v1496_v3 = vrot.slane %v1096_v30, 4  ;;  %v1122_v18 = vpop.permute.xlu2 %1121 }
 0x1ad   : > { %v1494_v39 = vrot.slane %v1122_v18, 4 }
 0x1ae   : > { %v1497_v19 = vsel %vm227_vm0, %v1122_v18, %v1496_v3  ;;  %v1529_v18 = vperm.slane %v1521_v52, %v2759_v26 }
 0x1af   : > { %v1495_v53 = vsel %vm227_vm0, %v1494_v39, %v1096_v30  ;;  %v1505_v14 = vperm.slane %v1497_v19, %v2750_v22  ;;  %v1541_v30 = vperm.slane %v1533_v6, %v2759_v26  ;;  %v1954_v6 = vrot.slane %v3409_v48, 4 }
 0x1b0   : > { %v1501_v46 = vperm.slane %v1495_v53, %v2750_v22  ;;  %v1525_v53 = vperm.slane %v1519_v63, %v2759_v26 }
 0x1b1   : > { %2148 = vrot.lane.b32.xlu1 %v1457_v2, %s2651_s27  ;;  %v1556_v27 = vrot.slane %v1505_v14, 4  ;;  %v1580_v1 = vrot.slane %v1541_v30, 4 }
 0x1b2   : > { %v1544_v3 = vrot.slane %v1501_v46, 4 }
 0x1b4   : > { %v1135_v10 = vpop.permute.xlu2 %1134 }
 0x1b5   : > { %v1506_v50 = vrot.slane %v1135_v10, 4  ;;  %v1509_v32 = vsel %vm227_vm0, %v1135_v10, %v1508_v9  ;;  %v1572_v10 = vrot.slane %v1529_v18, 4 }
 0x1b6   : > { %v1517_v0 = vperm.slane %v1509_v32, %v2750_v22 }
 0x1b7   : > { %v1507_v39 = vsel %vm227_vm0, %v1506_v50, %v1109_v8 }
 0x1b8   : > { %v1513_v19 = vperm.slane %v1507_v39, %v2750_v22  ;;  %v1554_v29 = vrot.slane %v1517_v0, 4  ;;  %v1557_v35 = vsel %vm227_vm0, %v1517_v0, %v1556_v27  ;;  %v1568_v0 = vrot.slane %v1525_v53, 4 }
 0x1b9   : > { %2162 = vrot.lane.b32.xlu1 %v3543_v15, %s2652_s30  ;;  %v1565_v2 = vperm.slane %v1557_v35, %v2759_v26  ;;  %v1576_v15 = vrot.slane %v1537_v38, 4 }
 0x1ba   : > { %v1542_v52 = vrot.slane %v1513_v19, 4  ;;  %v1545_v8 = vsel %vm227_vm0, %v1513_v19, %v1544_v3  ;;  %v1555_v34 = vsel %vm227_vm0, %v1554_v29, %v1505_v14 }
 0x1bb   : > { %v1115_v9 = vpop.permute.xlu1 %1114  ;;  %v1553_v32 = vperm.slane %v1545_v8, %v2759_v26  ;;  %v1561_v63 = vperm.slane %v1555_v34, %v2759_v26  ;;  %v3803_v39 = vsel %vm227_vm0, %v1565_v2, %v1580_v1  ;;  %v1578_v35 = vrot.slane %v1565_v2, 4 }
 0x1bc   : > { %v1956_v50 = vrot.slane %v1115_v9, 4  ;;  %v1543_v27 = vsel %vm227_vm0, %v1542_v52, %v1501_v46  ;;  %v1955_v29 = vsel %vm227_vm0, %v1954_v6, %v1115_v9  ;;  %v1944_v9 = vrot.slane %v3761_v62, 4 }
 0x1bd   : > { %v1549_v36 = vperm.slane %v1543_v27, %v2759_v26  ;;  %v1570_v14 = vrot.slane %v1553_v32, 4  ;;  %v1574_v19 = vrot.slane %v1561_v63, 4  ;;  %v3810_v8 = vsel %vm227_vm0, %v1553_v32, %v1572_v10 }
 0x1be   : > { %v1957_v3 = vsel %vm227_vm0, %v3409_v48, %v1956_v50  ;;  %v3813_v34 = vsel %vm227_vm0, %v1561_v63, %v1576_v15  ;;  %v3825_v6 = vsel %vm227_vm0, %v1578_v35, %v1541_v30  ;;  %v1985_v63 = vperm.slane %v3751_v42, %v2759_v26 }
 0x1bf   : > { %v1569_v46 = vsel %vm227_vm0, %v1549_v36, %v1568_v0  ;;  %v1566_v1 = vrot.slane %v1549_v36, 4  ;;  %v3817_v2 = vsel %vm227_vm0, %v1570_v14, %v1529_v18  ;;  %v3820_v52 = vsel %vm227_vm0, %v1574_v19, %v1537_v38 }
 0x1c0   : > { %2150 = vrot.lane.b32.xlu2 %v1569_v46, %s2651_s27  ;;  %v1965_v48 = vperm.slane %v1957_v3, %v2750_v22  ;;  %v1961_v36 = vperm.slane %v1955_v29, %v2750_v22  ;;  %v1458_v18 = vrot.slane %v3694_v11, 4  ;;  %v1973_v27 = vperm.slane %v3754_v25, %v2759_v26 }
 0x1c1   : > { %v3829_v10 = vsel %vm227_vm0, %v1566_v1, %v1525_v53  ;;  %v1977_v0 = vperm.slane %v3748_v49, %v2759_v26  ;;  %v1989_v11 = vperm.slane %v3745_v23, %v2759_v26  ;;  %v2024_v29 = vrot.slane %v1985_v63, 4 }
 0x1c2   : > { %4243 = vst [vmem:[#allocation12_spill] sm:$0xff] %v3829_v10  ;;  %v2002_v15 = vrot.slane %v1965_v48, 4  ;;  %v1990_v35 = vrot.slane %v1961_v36, 4  ;;  %v1459_v19 = vsel %vm227_vm0, %v1458_v18, %v3680_v37  ;;  %v2016_v23 = vrot.slane %v1973_v27, 4 }
 0x1c3   : > { %v1128_v50 = vpop.permute.xlu1 %1127  ;;  %v2020_v18 = vrot.slane %v1977_v0, 4 }
 0x1c4   : > { %v1942_v32 = vrot.slane %v1128_v50, 4  ;;  %v1945_v38 = vsel %vm227_vm0, %v1128_v50, %v1944_v9 }
 0x1c5   : > { %v1953_v30 = vperm.slane %v1945_v38, %v2750_v22  ;;  %v2028_v38 = vrot.slane %v1989_v11, 4 }
 0x1c6   : > { %v1943_v53 = vsel %vm227_vm0, %v1942_v32, %v3761_v62 }
 0x1c7   : > { %v1949_v3 = vperm.slane %v1943_v53, %v2750_v22  ;;  %v2003_v42 = vsel %vm227_vm0, %v2002_v15, %v1953_v30  ;;  %v2004_v14 = vrot.slane %v1953_v30, 4 }
 0x1c8   : > { %v2009_v25 = vperm.slane %v2003_v42, %v2759_v26  ;;  %2164 = vrot.lane.b32.xlu2 %v1459_v19, %s2652_s30  ;;  %v1154_v19 = vpop.permute.xlu2 %1153 }
 0x1c9   : > { %v1992_v62 = vrot.slane %v1949_v3, 4  ;;  %v2005_v49 = vsel %vm227_vm0, %v1965_v48, %v2004_v14  ;;  %v1991_v46 = vsel %vm227_vm0, %v1990_v35, %v1949_v3 }
 0x1ca   : > { %v1997_v1 = vperm.slane %v1991_v46, %v2759_v26  ;;  %v2022_v9 = vrot.slane %v2009_v25, 4  ;;  %v2013_v50 = vperm.slane %v2005_v49, %v2759_v26  ;;  %v3856_v32 = vsel %vm227_vm0, %v2009_v25, %v2024_v29 }
 0x1cb   : > { %v1993_v37 = vsel %vm227_vm0, %v1961_v36, %v1992_v62 }
 0x1cc   : > { %v2014_v15 = vrot.slane %v1997_v1, 4  ;;  %v3860_v30 = vsel %vm227_vm0, %v1997_v1, %v2016_v23  ;;  %v2001_v48 = vperm.slane %v1993_v37, %v2759_v26  ;;  %v3864_v53 = vsel %vm227_vm0, %v2022_v9, %v1985_v63 }
 0x1cd   : > { %v2026_v35 = vrot.slane %v2013_v50, 4  ;;  %v3867_v3 = vsel %vm227_vm0, %v2013_v50, %v2028_v38  ;;  %v2032_v23 = vrot.slane %v1154_v19, 4 }
 0x1ce   : > { %4244 = vst [vmem:[#allocation13_spill] sm:$0xff] %v3867_v3  ;;  %v3870_v42 = vsel %vm227_vm0, %v2001_v48, %v2020_v18  ;;  %v2018_v14 = vrot.slane %v2001_v48, 4  ;;  %v3873_v36 = vsel %vm227_vm0, %v2014_v15, %v1973_v27 }
 0x1cf   : > { %4245 = vst [vmem:[#allocation14_spill] sm:$0xff] %v3873_v36  ;;  %v3876_v25 = vsel %vm227_vm0, %v2026_v35, %v1989_v11 }
 0x1d0   : > { %v3879_v29 = vsel %vm227_vm0, %v2018_v14, %v1977_v0  ;;  %2178 = vrot.lane.b32.xlu2 %v3527_v7, %s2653_s3  ;;  %v1167_v63 = vpop.permute.xlu2 %1166 }
 0x1d1   : > { %v2044_v37 = vrot.slane %v1167_v63, 4 }
 0x1d3   : > { %v3883_v62 = vpop.permute.xlu1 %1147 }
 0x1db   : > { %v3887_v46 = vpop.permute.xlu1 %1160 }
 0x1dc   : > { %v3885_v49 = vpop.permute.xlu2 %1186 }
 0x1e4   : > { %v3889_v27 = vpop.permute.xlu2 %1199 }
 0x1eb   : > { %v1180_v1 = vpop.permute.xlu1 %1179 }
 0x1ec   : > { %v2030_v9 = vrot.slane %v1180_v1, 4  ;;  %v2033_v11 = vsel %vm227_vm0, %v1180_v1, %v2032_v23 }
 0x1ed   : > { %v2041_v50 = vperm.slane %v2033_v11, %v2750_v22 }
 0x1ee   : > { %v2031_v0 = vsel %vm227_vm0, %v2030_v9, %v1154_v19  ;;  %v3904_v9 = vpop.permute.xlu0 %1173 }
 0x1ef   : > { %v2037_v7 = vperm.slane %v2031_v0, %v2750_v22  ;;  %v2092_v48 = vrot.slane %v2041_v50, 4 }
 0x1f1   : > { %v2080_v24 = vrot.slane %v2037_v7, 4 }
 0x1f3   : > { %v1193_v18 = vpop.permute.xlu1 %1192 }
 0x1f4   : > { %v2042_v38 = vrot.slane %v1193_v18, 4  ;;  %v2045_v15 = vsel %vm227_vm0, %v1193_v18, %v2044_v37  ;;  %v3896_v35 = vpop.permute.xlu2 %1218 }
 0x1f5   : > { %v2053_v14 = vperm.slane %v2045_v15, %v2750_v22 }
 0x1f6   : > { %v2043_v36 = vsel %vm227_vm0, %v2042_v38, %v1167_v63  ;;  %v1594_v63 = vrot.slane %v3885_v49, 4 }
 0x1f7   : > { %v2049_v23 = vperm.slane %v2043_v36, %v2750_v22  ;;  %v2090_v19 = vrot.slane %v2053_v14, 4  ;;  %v3902_v1 = vsel %vm227_vm0, %v2053_v14, %v2092_v48  ;;  %v1582_v36 = vrot.slane %v3904_v9, 4  ;;  %v1239_v48 = vpop.permute.xlu0 %1238 }
 0x1f8   : > { %4246 = vst [vmem:[#allocation15_spill] sm:$0xff] %v3902_v1  ;;  %v1595_v15 = vsel %vm227_vm0, %v1594_v63, %v3887_v46 }
 0x1f9   : > { %v2078_v11 = vrot.slane %v2049_v23, 4  ;;  %v3907_v0 = vsel %vm227_vm0, %v2090_v19, %v2041_v50  ;;  %v3910_v37 = vsel %vm227_vm0, %v2049_v23, %v2080_v24  ;;  %v1601_v14 = vperm.slane %v1595_v15, %v2750_v22 }
 0x1fa   : > { %v1583_v24 = vsel %vm227_vm0, %v1582_v36, %v3883_v62  ;;  %v1618_v19 = vrot.slane %v1239_v48, 4 }
 0x1fb   : > { %v3913_v18 = vsel %vm227_vm0, %v2078_v11, %v2037_v7  ;;  %v1589_v11 = vperm.slane %v1583_v24, %v2750_v22  ;;  %v1630_v31 = vrot.slane %v1601_v14, 4 }
 0x1fc   : > { %v3916_v38 = vpop.permute.xlu2 %1231 }
 0x1fd   : > { %v1632_v3 = vrot.slane %v1589_v11, 4  ;;  %v1631_v15 = vsel %vm227_vm0, %v1630_v31, %v1589_v11 }
 0x1ff   : > { %v1633_v36 = vsel %vm227_vm0, %v1601_v14, %v1632_v3 }
 0x203   : > { %v1213_v50 = vpop.permute.xlu1 %1212 }
 0x204   : > { %v2147_v23 = vpop.permute.xlu2 %2146  ;;  %v1619_v10 = vsel %vm227_vm0, %v1618_v19, %v1213_v50 }
 0x205   : > { %v3926_v7 = vsel %vm787_vm1, %v3533_v54, %v2147_v23  ;;  %v1625_v63 = vperm.slane %v1619_v10, %v2750_v22  ;;  %v1637_v54 = vperm.slane %v1631_v15, %v2759_v26 }
 0x206   : > { %4247 = vst [vmem:[#allocation16_spill] sm:$0xff] %v3926_v7  ;;  %v1641_v7 = vperm.slane %v1633_v36, %v2759_v26 }
 0x207   : > { %v1654_v23 = vrot.slane %v1625_v63, 4  ;;  %v1680_v44 = vrot.slane %v1637_v54, 4 }
 0x208   : > { %v1684_v11 = vrot.slane %v1641_v7, 4 }
 0x20b   : > { %v1226_v1 = vpop.permute.xlu1 %1225 }
 0x20c   : > { %v1606_v12 = vrot.slane %v1226_v1, 4 }
 0x20e   : > { %v1607_v60 = vsel %vm227_vm0, %v1606_v12, %v3889_v27 }
 0x20f   : > { %v1613_v24 = vperm.slane %v1607_v60, %v2750_v22 }
 0x211   : > { %v1656_v19 = vrot.slane %v1613_v24, 4  ;;  %v1655_v16 = vsel %vm227_vm0, %v1654_v23, %v1613_v24  ;;  %v1620_v23 = vrot.slane %v1213_v50, 4  ;;  %v1596_v50 = vrot.slane %v3887_v46, 4 }
 0x212   : > { %v1661_v10 = vperm.slane %v1655_v16, %v2759_v26 }
 0x213   : > { %v1657_v31 = vsel %vm227_vm0, %v1625_v63, %v1656_v19  ;;  %v1608_v19 = vrot.slane %v3889_v27, 4  ;;  %v1597_v46 = vsel %vm227_vm0, %v3885_v49, %v1596_v50 }
 0x214   : > { %v1681_v3 = vsel %vm227_vm0, %v1661_v10, %v1680_v44  ;;  %v1678_v14 = vrot.slane %v1661_v10, 4  ;;  %v1665_v12 = vperm.slane %v1657_v31, %v2759_v26  ;;  %v2054_v44 = vrot.slane %v3916_v38, 4 }
 0x215   : > { %2152 = vrot.lane.b32.xlu0 %v1681_v3, %s2651_s27  ;;  %v1621_v31 = vsel %vm227_vm0, %v1239_v48, %v1620_v23  ;;  %v1609_v3 = vsel %vm227_vm0, %v1226_v1, %v1608_v19  ;;  %v2085_v1 = vperm.slane %v3913_v18, %v2759_v26 }
 0x216   : > { %v1685_v60 = vsel %vm227_vm0, %v1665_v12, %v1684_v11  ;;  %v1682_v15 = vrot.slane %v1665_v12, 4  ;;  %v3946_v36 = vsel %vm227_vm0, %v1678_v14, %v1637_v54  ;;  %v2055_v54 = vsel %vm227_vm0, %v2054_v44, %v3414_v56 }
 0x217   : > { %2184 = vrot.lane.b32.xlu2 %v1685_v60, %s2653_s3  ;;  %v1629_v14 = vperm.slane %v1621_v31, %v2750_v22  ;;  %v1617_v12 = vperm.slane %v1609_v3, %v2750_v22  ;;  %v1605_v60 = vperm.slane %v1597_v46, %v2750_v22 }
 0x218   : > { %v1683_v16 = vsel %vm227_vm0, %v1682_v15, %v1641_v7 }
 0x219   : > { %2168 = vrot.lane.b32.xlu1 %v1683_v16, %s2652_s30  ;;  %v1666_v15 = vrot.slane %v1629_v14, 4  ;;  %v1668_v16 = vrot.slane %v1617_v12, 4  ;;  %v1642_v18 = vrot.slane %v1605_v60, 4 }
 0x21b   : > { %v3952_v63 = vpop.permute.xlu1 %1244  ;;  %v1667_v44 = vsel %vm227_vm0, %v1666_v15, %v1617_v12  ;;  %v1669_v23 = vsel %vm227_vm0, %v1629_v14, %v1668_v16 }
 0x21c   : > { %v2066_v24 = vrot.slane %v3952_v63, 4 }
 0x21d   : > { %2166 = vrot.lane.b32.xlu0 %v3817_v2, %s2652_s30  ;;  %v2061_v2 = vperm.slane %v2055_v54, %v2750_v22 }
 0x21e   : > { %v2067_v7 = vsel %vm227_vm0, %v2066_v24, %v3896_v35  ;;  %v1673_v24 = vperm.slane %v1667_v44, %v2759_v26 }
 0x21f   : > { %v2073_v10 = vperm.slane %v2067_v7, %v2750_v22  ;;  %2198 = vrot.lane.b32.xlu2 %v3820_v52, %s2654_s4  ;;  %v1584_v52 = vrot.slane %v3883_v62, 4 }
 0x220   : > { %v1686_v54 = vrot.slane %v1673_v24, 4 }
 0x221   : > { %v2102_v27 = vrot.slane %v2073_v10, 4  ;;  %2182 = vrot.lane.b32.xlu1 %v3810_v8, %s2653_s3  ;;  %v1585_v62 = vsel %vm227_vm0, %v3904_v9, %v1584_v52 }
 0x223   : > { %v2103_v11 = vsel %vm227_vm0, %v2102_v27, %v2061_v2 }
 0x224   : > { %v2109_v48 = vperm.slane %v2103_v11, %v2759_v26 }
 0x225   : > { %2180 = vrot.lane.b32.xlu0 %v3708_v61, %s2653_s3  ;;  %v1593_v61 = vperm.slane %v1585_v62, %v2750_v22 }
 0x226   : > { %v2126_v8 = vrot.slane %v2109_v48, 4 }
 0x227   : > { %2212 = vrot.lane.b32.xlu2 %v3711_v41, %s2655_s5  ;;  %v1677_v41 = vperm.slane %v1669_v23, %v2759_v26  ;;  %v1644_v9 = vrot.slane %v1593_v61, 4  ;;  %v1643_v19 = vsel %vm227_vm0, %v1642_v18, %v1593_v61  ;;  %v4252_v18 = vld [vmem:[#allocation15_spill] sm:$0xff] }
 0x228   : > { %v3988_v49 = vsel %vm227_vm0, %v2126_v8, %v2085_v1  ;;  %v1649_v7 = vperm.slane %v1643_v19, %v2759_v26  ;;  %v4248_v8 = vld [vmem:[#allocation8_spill] sm:$0xff]  ;;  %v2101_v23 = vperm.slane %v4252_v18, %v2759_v26 }
 0x229   : > { %2196 = vrot.lane.b32.xlu1 %v3722_v4, %s2654_s4  ;;  %v1645_v4 = vsel %vm227_vm0, %v1605_v60, %v1644_v9  ;;  %v1690_v50 = vrot.slane %v1677_v41, 4 }
 0x22a   : > { %v1687_v31 = vsel %vm227_vm0, %v1686_v54, %v1649_v7  ;;  %v2140_v9 = vrot.slane %v2101_v23, 4 }
 0x22d   : > { %2194 = vrot.lane.b32.xlu0 %v3524_v33, %s2654_s4  ;;  %v1653_v33 = vperm.slane %v1645_v4, %v2759_v26 }
 0x22f   : > { %2226 = vrot.lane.b32.xlu2 %v3550_v17, %s2656_s6  ;;  %v1691_v3 = vsel %vm227_vm0, %v1690_v50, %v1653_v33  ;;  %v1688_v17 = vrot.slane %v1649_v7, 4  ;;  %v4253_v50 = vld [vmem:[#allocation13_spill] sm:$0xff] }
 0x231   : > { %2210 = vrot.lane.b32.xlu1 %v3511_v45, %s2655_s5  ;;  %v1689_v27 = vsel %vm227_vm0, %v1673_v24, %v1688_v17  ;;  %v2104_v45 = vrot.slane %v2061_v2, 4 }
 0x233   : > { %v2105_v14 = vsel %vm227_vm0, %v2073_v10, %v2104_v45  ;;  %v2128_v10 = vrot.slane %v2085_v1, 4  ;;  %v4254_v45 = vld [vmem:[#allocation12_spill] sm:$0xff] }
 0x235   : > { %2200 = vrot.lane.b32.xlu0 %v1687_v31, %s2654_s4 }
 0x237   : > { %2232 = vrot.lane.b32.xlu2 %v1691_v3, %s2656_s6 }
 0x239   : > { %2216 = vrot.lane.b32.xlu1 %v1689_v27, %s2655_s5 }
 0x23d   : > { %2214 = vrot.lane.b32.xlu0 %v3813_v34, %s2655_s5 }
 0x23f   : > { %2246 = vrot.lane.b32.xlu2 %v3803_v39, %s2657_s7  ;;  %v2113_v39 = vperm.slane %v2105_v14, %v2759_v26 }
 0x241   : > { %2230 = vrot.lane.b32.xlu1 %v3825_v6, %s2656_s6  ;;  %v2130_v34 = vrot.slane %v2113_v39, 4  ;;  %v4036_v6 = vpop.permute.xlu2 %2150 }
 0x242   : > { %v2368_v14 = vsel %vm787_vm1, %v4254_v45, %v4036_v6 }
 0x245   : > { %2228 = vrot.lane.b32.xlu0 %v3714_v20, %s2656_s6  ;;  %v1692_v20 = vrot.slane %v1653_v33, 4 }
 0x247   : > { %2260 = vrot.lane.b32.xlu2 %v3652_v55, %s2651_s27  ;;  %v1693_v55 = vsel %vm227_vm0, %v1677_v41, %v1692_v20 }
 0x249   : > { %2244 = vrot.lane.b32.xlu1 %v3698_v51, %s2657_s7  ;;  %v2089_v51 = vperm.slane %v3910_v37, %v2759_v26  ;;  %v4046_v2 = vpop.permute.xlu2 %2164 }
 0x24d   : > { %2242 = vrot.lane.b32.xlu0 %v3536_v13, %s2657_s7  ;;  %v2131_v13 = vsel %vm227_vm0, %v2130_v34, %v2089_v51 }
 0x24f   : > { %2274 = vrot.lane.b32.xlu2 %v3485_v58, %s2652_s30  ;;  %v2129_v58 = vsel %vm227_vm0, %v2109_v48, %v2128_v10 }
 0x251   : > { %2258 = vrot.lane.b32.xlu1 %v3500_v40, %s2651_s27  ;;  %v2068_v40 = vrot.slane %v3896_v35, 4  ;;  %v4062_v11 = vpop.permute.xlu2 %2178 }
 0x253   : > { %v2069_v37 = vsel %vm227_vm0, %v3952_v63, %v2068_v40 }
 0x254   : > { %v2077_v12 = vperm.slane %v2069_v37, %v2750_v22 }
 0x255   : > { %2248 = vrot.lane.b32.xlu0 %v1693_v55, %s2657_s7  ;;  %v4255_v55 = vld [vmem:[#allocation11_spill] sm:$0xff] }
 0x257   : > { %2280 = vrot.lane.b32.xlu2 %v2131_v13, %s2652_s30 }
 0x259   : > { %2264 = vrot.lane.b32.xlu1 %v2129_v58, %s2651_s27 }
 0x25d   : > { %2262 = vrot.lane.b32.xlu0 %v3860_v30, %s2651_s27  ;;  %v2056_v30 = vrot.slane %v3414_v56, 4  ;;  %v2097_v56 = vperm.slane %v3907_v0, %v2759_v26  ;;  %v2149_v0 = vpop.permute.xlu1 %2148 }
 0x25f   : > { %2294 = vrot.lane.b32.xlu2 %v3870_v42, %s2653_s3  ;;  %v2057_v35 = vsel %vm227_vm0, %v3916_v38, %v2056_v30  ;;  %v2114_v42 = vrot.slane %v2077_v12, 4  ;;  %v2136_v63 = vrot.slane %v2097_v56, 4 }
 0x261   : > { %2278 = vrot.lane.b32.xlu1 %v3879_v29, %s2652_s30  ;;  %v2065_v29 = vperm.slane %v2057_v35, %v2750_v22  ;;  %v4256_v35 = vld [vmem:[#allocation16_spill] sm:$0xff] }
 0x263   : > { %v2116_v1 = vrot.slane %v2065_v29, 4 }
 0x265   : > { %2276 = vrot.lane.b32.xlu0 %v3655_v21, %s2652_s30  ;;  %v2115_v21 = vsel %vm227_vm0, %v2114_v42, %v2065_v29  ;;  %v2117_v15 = vsel %vm227_vm0, %v2077_v12, %v2116_v1 }
 0x267   : > { %2308 = vrot.lane.b32.xlu2 %v3658_v59, %s2654_s4  ;;  %v2121_v59 = vperm.slane %v2115_v21, %v2759_v26 }
 0x269   : > { %2292 = vrot.lane.b32.xlu1 %v3646_v47, %s2653_s3  ;;  %v2132_v47 = vrot.slane %v2089_v51, 4  ;;  %v2137_v52 = vsel %vm227_vm0, %v2121_v59, %v2136_v63  ;;  %v2367_v51 = vsel %vm787_vm1, %v4255_v55, %v2149_v0 }
 0x26a   : > { %v2371_v37 = vsel %vm792_vm2, %v2367_v51, %v4046_v2 }
 0x26b   : > { %v2133_v22 = vsel %vm227_vm0, %v2113_v39, %v2132_v47 }
 0x26d   : > { %2290 = vrot.lane.b32.xlu0 %v3471_v57, %s2653_s3  ;;  %v2134_v57 = vrot.slane %v2121_v59, 4 }
 0x26f   : > { %2322 = vrot.lane.b32.xlu2 %v3546_v28, %s2655_s5  ;;  %v2135_v28 = vsel %vm227_vm0, %v2134_v57, %v2097_v56 }
 0x271   : > { %v4075_v38 = vpop.permute.xlu2 %2184  ;;  %2306 = vrot.lane.b32.xlu1 %v3558_v43, %s2654_s4  ;;  %v2163_v43 = vpop.permute.xlu1 %2162 }
 0x272   : > { %v2370_v42 = vsel %vm792_vm2, %v4256_v35, %v2163_v43  ;;  %v4259_v35 = vld [vmem:[#allocation14_spill] sm:$0xff] }
 0x273   : > { %v2374_v56 = vsel %vm797_vm3, %v2370_v42, %v4062_v11 }
 0x275   : > { %2296 = vrot.lane.b32.xlu0 %v2133_v22, %s2653_s3 }
 0x277   : > { %2328 = vrot.lane.b32.xlu2 %v2137_v52, %s2655_s5 }
 0x279   : > { %2312 = vrot.lane.b32.xlu1 %v2135_v28, %s2654_s4  ;;  %v2199_v46 = vpop.permute.xlu2 %2198 }
 0x27d   : > { %2310 = vrot.lane.b32.xlu0 %v3864_v53, %s2654_s4  ;;  %v4249_v53 = vld [vmem:[#allocation9_spill] sm:$0xff]  ;;  %s2442_s4 = scalar_lea.hbm %s4224_s2, %s2505_s29 }
 0x27f   : > { %2342 = vrot.lane.b32.xlu2 %v3876_v25, %s2656_s6  ;;  %v2125_v25 = vperm.slane %v2117_v15, %v2759_v26 }
 0x281   : > { %2326 = vrot.lane.b32.xlu1 %v3856_v32, %s2655_s5  ;;  %v2213_v48 = vpop.permute.xlu2 %2212  ;;  %v4250_v32 = vld [vmem:[#allocation7_spill] sm:$0xff]  ;;  %v2138_v61 = vrot.slane %v2125_v25, 4  ;;  %v2141_v4 = vsel %vm227_vm0, %v2125_v25, %v2140_v9 }
 0x283   : > { %v2139_v41 = vsel %vm227_vm0, %v2138_v61, %v2101_v23 }
 0x285   : > { %2324 = vrot.lane.b32.xlu0 %v3649_v5, %s2655_s5  ;;  %v4251_v5 = vld [vmem:[#allocation5_spill] sm:$0xff]  ;;  %s2445_s5 = sshll.u32 %s2442_s4, 4  ;;  %s2446_s5 = int_to_ptr.hbm [resolvable:$true] %s2445_s5 }
 0x287   : > { %2356 = vrot.lane.b32.xlu2 %v4248_v8, %s2657_s7  ;;  %v2153_v60 = vpop.permute.xlu0 %2152 }
 0x288   : > { %v2369_v52 = vsel %vm787_vm1, %v3946_v36, %v2153_v60 }
 0x289   : > { %2340 = vrot.lane.b32.xlu1 %v4249_v53, %s2656_s6  ;;  %v2227_v62 = vpop.permute.xlu2 %2226 }
 0x28b   : > { %v2169_v16 = vpop.permute.xlu1 %2168 }
 0x28c   : > { %v2373_v28 = vsel %vm792_vm2, %v2369_v52, %v2169_v16 }
 0x28d   : > { %2338 = vrot.lane.b32.xlu0 %v4250_v32, %s2656_s6 }
 0x28f   : > { %v2167_v44 = vpop.permute.xlu0 %2166 }
 0x290   : > { %v2372_v39 = vsel %vm792_vm2, %v2368_v14, %v2167_v44 }
 0x291   : > { %2354 = vrot.lane.b32.xlu1 %v4251_v5, %s2657_s7  ;;  %v2233_v54 = vpop.permute.xlu2 %2232 }
 0x293   : > { %v2183_v24 = vpop.permute.xlu1 %2182 }
 0x294   : > { %v2376_v20 = vsel %vm797_vm3, %v2372_v39, %v2183_v24 }
 0x295   : > { %2344 = vrot.lane.b32.xlu0 %v2139_v41, %s2656_s6  ;;  %v2380_v13 = vsel %vm802_vm4, %v2376_v20, %v2199_v46  ;;  %s2431_s6 = scalar_lea.sflag [#allocation3], %s119_s25 }
 0x297   : > { %v2181_v19 = vpop.permute.xlu0 %2180 }
 0x298   : > { %v2375_v12 = vsel %vm797_vm3, %v2371_v37, %v2181_v19 }
 0x299   : > { %2360 = vrot.lane.b32.xlu1 %v2141_v4, %s2657_s7  ;;  %v2247_v33 = vpop.permute.xlu2 %2246 }
 0x29b   : > { %v2197_v7 = vpop.permute.xlu1 %2196 }
 0x29c   : > { %v2379_v29 = vsel %vm802_vm4, %v2375_v12, %v2197_v7  ;;  %v4257_v7 = vld [vmem:[#allocation10_spill] sm:$0xff] }
 0x29d   : > { %2358 = vrot.lane.b32.xlu0 %v4253_v50, %s2657_s7  ;;  %v2383_v59 = vsel %vm807_vm5, %v2379_v29, %v2213_v48  ;;  %v2377_v48 = vsel %vm797_vm3, %v2373_v28, %v4075_v38  ;;  %s2599_s7 = sshra.s32 %s2446_s5, 4  ;;  %s2600_s7 = int_to_ptr.hbm [resolvable:$true] %s2599_s7 }
 0x29e   : > { %s2601_s8 = scalar_lea.hbm %s2600_s7, 128  ;;  %p2606_p13 = scmp.lt.s32.totalorder %s2600_s7, %s4224_s2 }
 0x29f   : > { %v2195_v31 = vpop.permute.xlu0 %2194  ;;  %p2602_p10 = scmp.ne.s32.totalorder %s2600_s7, %s2601_s8  ;;  %p2607_p0 = scmp.lt.s32.totalorder %s2605_s17, %s2601_s8 }
 0x2a0   : > { %v2378_v2 = vsel %vm802_vm4, %v2374_v56, %v2195_v31 }
 0x2a1   : > { %v2261_v27 = vpop.permute.xlu2 %2260  ;;  %p2603_p11 = pnand %p2602_p10, %p2711_p5  ;;  %p2608_p1 = por %p2607_p0, %p2606_p13 }
 0x2a2   : > { %v2395_v50 = vsel %vm787_vm1, %v4257_v7, %v2261_v27 }
 0x2a3   : > { %v2211_v3 = vpop.permute.xlu1 %2210  ;;  %p2604_p12 = pneg %p2603_p11 }
 0x2a4   : > { %v2382_v63 = vsel %vm807_vm5, %v2378_v2, %v2211_v3 }
 0x2a5   : > { %v2386_v11 = vsel %vm812_vm7, %v2382_v63, %v2227_v62  ;;  %p2609_p2 = pnand %p2608_p1, %p2604_p12 }
 0x2a7   : > { %v2201_v26 = vpop.permute.xlu0 %2200 }
 0x2a8   : > { %v2381_v1 = vsel %vm802_vm4, %v2377_v48, %v2201_v26  ;;  %v4258_v26 = vld [vmem:[#allocation6_spill] sm:$0xff] }
 0x2a9   : > { %v2275_v30 = vpop.permute.xlu2 %2274 }
 0x2ab   : > { %v2217_v17 = vpop.permute.xlu1 %2216 }
 0x2ac   : > { %v2385_v15 = vsel %vm807_vm5, %v2381_v1, %v2217_v17 }
 0x2ad   : > { %v2389_v36 = vsel %vm812_vm7, %v2385_v15, %v2233_v54 }
 0x2af   : > { %v2215_v34 = vpop.permute.xlu0 %2214 }
 0x2b0   : > { %v2384_v10 = vsel %vm807_vm5, %v2380_v13, %v2215_v34 }
 0x2b1   : > { %v2281_v46 = vpop.permute.xlu2 %2280 }
 0x2b3   : > { %v2231_v58 = vpop.permute.xlu1 %2230 }
 0x2b4   : > { %v2388_v40 = vsel %vm812_vm7, %v2384_v10, %v2231_v58 }
 0x2b5   : > { %v2392_v6 = vsel %vm817_vm6, %v2388_v40, %v2247_v33 }
 0x2b6   : > { %2426 = vst [vmem:[%s3317_s28 + $0x60] sm:$0xff] %v2392_v6 }
 0x2b7   : > { %v2229_v21 = vpop.permute.xlu0 %2228 }
 0x2b8   : > { %v2387_v47 = vsel %vm812_vm7, %v2383_v59, %v2229_v21 }
 0x2b9   : > { %v2295_v16 = vpop.permute.xlu2 %2294 }
 0x2bb   : > { %v2245_v22 = vpop.permute.xlu1 %2244 }
 0x2bc   : > { %v2391_v57 = vsel %vm817_vm6, %v2387_v47, %v2245_v22 }
 0x2bd   : > { %2424 = vst [vmem:[%s3317_s28 + $0x50] sm:$0xff] %v2391_v57 }
 0x2bf   : > { %v2243_v0 = vpop.permute.xlu0 %2242 }
 0x2c0   : > { %v2390_v43 = vsel %vm817_vm6, %v2386_v11, %v2243_v0 }
 0x2c1   : > { %2422 = vst [vmem:[%s3317_s28 + $0x40] sm:$0xff] %v2390_v43  ;;  %v2309_v44 = vpop.permute.xlu2 %2308 }
 0x2c3   : > { %v2259_v8 = vpop.permute.xlu1 %2258 }
 0x2c4   : > { %v2394_v17 = vsel %vm787_vm1, %v4258_v26, %v2259_v8 }
 0x2c5   : > { %v2398_v27 = vsel %vm792_vm2, %v2394_v17, %v2275_v30 }
 0x2c7   : > { %v2249_v53 = vpop.permute.xlu0 %2248 }
 0x2c8   : > { %v2393_v60 = vsel %vm817_vm6, %v2389_v36, %v2249_v53 }
 0x2c9   : > { %2428 = vst [vmem:[%s3317_s28 + $0x70] sm:$0xff] %v2393_v60  ;;  %v2323_v18 = vpop.permute.xlu2 %2322 }
 0x2cb   : > { %v2265_v25 = vpop.permute.xlu1 %2264 }
 0x2cc   : > { %v2397_v58 = vsel %vm787_vm1, %v3988_v49, %v2265_v25 }
 0x2cd   : > { %v2401_v30 = vsel %vm792_vm2, %v2397_v58, %v2281_v46 }
 0x2cf   : > { %v2263_v32 = vpop.permute.xlu0 %2262 }
 0x2d0   : > { %v2396_v42 = vsel %vm787_vm1, %v4259_v35, %v2263_v32 }
 0x2d1   : > { %v2329_v41 = vpop.permute.xlu2 %2328 }
 0x2d3   : > { %v2279_v62 = vpop.permute.xlu1 %2278 }
 0x2d4   : > { %v2400_v49 = vsel %vm792_vm2, %v2396_v42, %v2279_v62 }
 0x2d5   : > { %v2404_v59 = vsel %vm797_vm3, %v2400_v49, %v2295_v16 }
 0x2d7   : > { %v2277_v61 = vpop.permute.xlu0 %2276 }
 0x2d8   : > { %v2399_v31 = vsel %vm792_vm2, %v2395_v50, %v2277_v61 }
 0x2d9   : > { %v2343_v4 = vpop.permute.xlu2 %2342 }
 0x2db   : > { %v2293_v5 = vpop.permute.xlu1 %2292 }
 0x2dc   : > { %v2403_v33 = vsel %vm797_vm3, %v2399_v31, %v2293_v5 }
 0x2dd   : > { %v2407_v45 = vsel %vm802_vm4, %v2403_v33, %v2309_v44 }
 0x2df   : > { %v2291_v38 = vpop.permute.xlu0 %2290 }
 0x2e0   : > { %v2402_v51 = vsel %vm797_vm3, %v2398_v27, %v2291_v38 }
 0x2e1   : > { %v2357_v20 = vpop.permute.xlu2 %2356 }
 0x2e3   : > { %v2307_v23 = vpop.permute.xlu1 %2306 }
 0x2e4   : > { %v2406_v13 = vsel %vm802_vm4, %v2402_v51, %v2307_v23 }
 0x2e5   : > { %v2410_v40 = vsel %vm807_vm5, %v2406_v13, %v2323_v18 }
 0x2e7   : > { %v2297_v24 = vpop.permute.xlu0 %2296 }
 0x2e8   : > { %v2405_v29 = vsel %vm797_vm3, %v2401_v30, %v2297_v24 }
 0x2eb   : > { %v2313_v9 = vpop.permute.xlu1 %2312 }
 0x2ec   : > { %v2409_v21 = vsel %vm802_vm4, %v2405_v29, %v2313_v9 }
 0x2ed   : > { %v2413_v2 = vsel %vm807_vm5, %v2409_v21, %v2329_v41 }
 0x2ef   : > { %v2311_v19 = vpop.permute.xlu0 %2310 }
 0x2f0   : > { %v2408_v47 = vsel %vm802_vm4, %v2404_v59, %v2311_v19 }
 0x2f3   : > { %v2327_v54 = vpop.permute.xlu1 %2326 }
 0x2f4   : > { %v2412_v57 = vsel %vm807_vm5, %v2408_v47, %v2327_v54 }
 0x2f5   : > { %v2416_v28 = vsel %vm812_vm7, %v2412_v57, %v2343_v4 }
 0x2f7   : > { %v2325_v3 = vpop.permute.xlu0 %2324 }
 0x2f8   : > { %v2411_v14 = vsel %vm807_vm5, %v2407_v45, %v2325_v3 }
 0x2fb   : > { %v2341_v39 = vpop.permute.xlu1 %2340 }
 0x2fc   : > { %v2415_v34 = vsel %vm812_vm7, %v2411_v14, %v2341_v39 }
 0x2fd   : > { %v2419_v55 = vsel %vm817_vm6, %v2415_v34, %v2357_v20 }
 0x2fe   : > { %2425 = vst [vmem:[%s3317_s28 + $0x58] sm:$0xff] %v2419_v55 }
 0x2ff   : > { %v2339_v10 = vpop.permute.xlu0 %2338 }
 0x300   : > { %v2414_v37 = vsel %vm812_vm7, %v2410_v40, %v2339_v10 }
 0x303   : > { %v2355_v6 = vpop.permute.xlu1 %2354 }
 0x304   : > { %v2418_v12 = vsel %vm817_vm6, %v2414_v37, %v2355_v6 }
 0x305   : > { %2423 = vst [vmem:[%s3317_s28 + $0x48] sm:$0xff] %v2418_v12 }
 0x307   : > { %v2345_v56 = vpop.permute.xlu0 %2344 }
 0x308   : > { %v2417_v22 = vsel %vm812_vm7, %v2413_v2, %v2345_v56 }
 0x30b   : > { %v2361_v63 = vpop.permute.xlu1 %2360 }
 0x30c   : > { %v2421_v52 = vsel %vm817_vm6, %v2417_v22, %v2361_v63 }
 0x30d   : > { %2429 = vst [vmem:[%s3317_s28 + $0x78] sm:$0xff] %v2421_v52 }
 0x30f   : > { %v2359_v11 = vpop.permute.xlu0 %2358 }
 0x310   : > { %v2420_v0 = vsel %vm817_vm6, %v2416_v28, %v2359_v11 }
 0x311   : > { %2427 = vst [vmem:[%s3317_s28 + $0x68] sm:$0xff] %v2420_v0 }
 0x312   : > { %2612 = shalt.err (!%p2609_p2)
}
 0x313   : > { %s2658_s23 = smov 256  }
 0x314   : > { %2506 = dma.vmem_to_hbm [thread:$0]  (%p2711_p5), %s2444_s13, 2048, %s2446_s5, %s2431_s6, %s2658_s23, %s2658_s23, %s2651_s27  }
 0x315 PF: > { %p2512_p3 = scmp.ge.s32.totalorder %s2647_s12, 2  ;;  %s2460_s24 = sand.u32 1, %s2635_s9  }
 0x316   : > { %s2461_s25 = scalar_lea.sflag [#allocation3], %s2460_s24 }
 0x317   : > { %p2509_p4 = pnand %p2512_p3, %p2715_p6 }
 0x319   : > { %p2510_p7 = pneg %p2509_p4 }
 0x31b   : > { %2630 = dma.done.wait (%p2510_p7), %s2461_s25, 2048  }
 0x31c   : > { %2632 = vsyncadd (%p2510_p7), %s2461_s25, 4294965248  ;;  %p12_p8 = scmp.ge.s32.totalorder %s2697_s15, 4   ;;  %s4260_s9 = smov %s2639_s10 }
 0x31d   : > { %s4261_s10 = smov %s2643_s11  ;;  %s4262_s11 = smov %s2709_s18 }
 0x31e   : > { %s4263_s12 = smov %s2697_s15  ;;  %14 = sbr.rel (!%p12_p8) target bundleno = 3 (0x3), region = 60 }
 0x323   :  { %2467 = vsyncpa [#allocation3], 1 }
 0x324   :  { %2469 = vsyncpa [#allocation3 + $0x1], 1 }

</bundles_post_ra>
